<compile_context>
chip_gen: v7x
topology: tpu7x:2x2x1
jax: 0.10.0
libtpu: 0.0.40
codegen_flags: <defaults>
</compile_context>

<pallas_src>
import math

import jax
import jax.numpy as jnp
from jax.experimental import pallas as pl
from jax.experimental.pallas import tpu as pltpu

_LANE = 128      # lane width (last-dim alignment)
_SUBLANE = 8     # f32 sublane alignment for batch tiles


def _round_up(v, m):
    return (v + m - 1) // m * m


def _make_mlp_kernel(n_layers: int, use_softmax: bool, compute_dtype):
    """Kernel computing the full MLP on one (batch_tile, *) block in VMEM."""

    def kernel(*refs):
        x_ref = refs[0]
        param_refs = refs[1:1 + 2 * n_layers]
        out_ref = refs[1 + 2 * n_layers]

        h = x_ref[...]                                   # compute_dtype (bf16)
        for l in range(n_layers):
            w = param_refs[2 * l][...]                   # (in_pad, out_pad) bf16
            b = param_refs[2 * l + 1][...]               # (1, out_pad) f32
            # bf16 x bf16 -> f32 accumulation on the MXU.
            h = jnp.dot(h, w, preferred_element_type=jnp.float32) + b
            if l < n_layers - 1:
                h = jnp.maximum(h, 0.0).astype(compute_dtype)   # ReLU, back to bf16

        if use_softmax:
            m = jnp.max(h, axis=1, keepdims=True)
            e = jnp.exp(h - m)       # padded logits are ~-1e30 -> exp == 0
            h = e * pl.reciprocal(jnp.sum(e, axis=1, keepdims=True), approx=True)
        else:
            h = 1.0 / (1.0 + jnp.exp(-h))                # Sigmoid

        out_ref[...] = h.astype(out_ref.dtype)

    return kernel


def classifier_forward(x, params, *, n_classes, batch_tile=None,
                       compute_dtype=jnp.bfloat16):
    """x: (B, n_inputs) float32. params: list of (W, b) with W (in, out), b (out,)."""
    B, n_in = x.shape
    n_layers = len(params)
    use_softmax = n_classes > 2
    out_dim = params[-1][0].shape[1]

    # ---- batch tiling: fixed-size, sublane-aligned tiles; grid walks batch ----
    if batch_tile is None:
        batch_tile = min(256, _round_up(B, _SUBLANE))
    batch_tile = _round_up(batch_tile, _SUBLANE)
    b_pad = _round_up(B, batch_tile)

    # ---- pad every feature dim to a multiple of 128 lanes ---------------------
    in_pad = _round_up(n_in, _LANE)
    out_pad = _round_up(out_dim, _LANE)

    x_p = jnp.zeros((b_pad, in_pad), compute_dtype)
    x_p = x_p.at[:B, :n_in].set(x.astype(compute_dtype))

    flat = []
    in_specs = [pl.BlockSpec((batch_tile, in_pad), lambda i: (i, 0))]
    widths = [in_pad]
    prev_pad = in_pad
    for li, (w, b) in enumerate(params):
        fi, fo = w.shape
        fo_pad = out_pad if li == n_layers - 1 else _round_up(fo, _LANE)
        w_p = jnp.zeros((prev_pad, fo_pad), compute_dtype)
        w_p = w_p.at[:fi, :fo].set(w.astype(compute_dtype))
        if li == n_layers - 1 and use_softmax:
            # Padded logit columns must vanish under softmax.
            b_p = jnp.full((1, fo_pad), -1e30, jnp.float32)
        else:
            b_p = jnp.zeros((1, fo_pad), jnp.float32)
        b_p = b_p.at[0, :fo].set(b.astype(jnp.float32))
        flat += [w_p, b_p]
        in_specs.append(pl.BlockSpec((prev_pad, fo_pad), lambda i: (0, 0)))
        in_specs.append(pl.BlockSpec((1, fo_pad), lambda i: (0, 0)))
        widths.append(fo_pad)
        prev_pad = fo_pad

    # ---- explicit VMEM budget (v7x scoped default is only 32 MiB) -------------
    w_bytes = sum(a.size * a.dtype.itemsize for a in flat)
    io_bytes = (2 * batch_tile * in_pad * jnp.dtype(compute_dtype).itemsize
                + 2 * batch_tile * out_pad * 4)
    act_bytes = 4 * batch_tile * max(widths) * 4          # intermediate h headroom
    vmem_limit = int(min(max(2 * w_bytes + io_bytes + act_bytes + (4 << 20),
                             16 << 20), 48 << 20))

    kernel = _make_mlp_kernel(n_layers, use_softmax, compute_dtype)

    out_p = pl.pallas_call(
        kernel,
        out_shape=jax.ShapeDtypeStruct((b_pad, out_pad), jnp.float32),
        grid_spec=pltpu.PrefetchScalarGridSpec(
            num_scalar_prefetch=0,
            grid=(b_pad // batch_tile,),
            in_specs=in_specs,
            out_specs=pl.BlockSpec((batch_tile, out_pad), lambda i: (i, 0)),
        ),
        compiler_params=pltpu.CompilerParams(
            dimension_semantics=("parallel",),
            vmem_limit_bytes=vmem_limit),
    )(x_p, *flat)

    return out_p[:B, :out_dim].astype(x.dtype)


def init_classifier_params(key, n_layers, n_inputs, n_hidden_units, n_classes):
    """Deterministic init mimicking nn.Linear's U(-1/sqrt(fan_in), 1/sqrt(fan_in)).
    Returns list of (W, b) with W stored as (in_features, out_features)."""
    out_last = n_classes if n_classes > 2 else 1
    if n_layers == 1:
        dims = [(n_inputs, out_last)]
    else:
        dims = [(n_inputs, n_hidden_units)]
        dims += [(n_hidden_units, n_hidden_units)] * (n_layers - 2)
        dims += [(n_hidden_units, out_last)]

    params = []
    for (fan_in, fan_out) in dims:
        key, kw, kb = jax.random.split(key, 3)
        bound = 1.0 / math.sqrt(fan_in)
        w = jax.random.uniform(kw, (fan_in, fan_out), jnp.float32, -bound, bound)
        b = jax.random.uniform(kb, (fan_out,), jnp.float32, -bound, bound)
        params.append((w, b))
    return params


def classifier_reference(x, params, n_classes):
    h = x
    for i, (w, b) in enumerate(params):
        h = h @ w + b
        if i < len(params) - 1:
            h = jnp.maximum(h, 0.0)
    if n_classes > 2:
        return jax.nn.softmax(h, axis=1)
    return jax.nn.sigmoid(h)


if __name__ == "__main__":
    key = jax.random.PRNGKey(0)

    # --- multi-class (softmax) path: 3-layer MLP, 4 classes --------------------
    n_layers, n_inputs, n_hidden_units, n_classes = 3, 32, 32, 4
    batch = 384                      # padded to 512 -> grid of 2 tiles of 256 rows

    key, kx, kp = jax.random.split(key, 3)
    x = jax.random.normal(kx, (batch, n_inputs), jnp.float32)
    params = init_classifier_params(kp, n_layers, n_inputs, n_hidden_units, n_classes)

    out = jax.block_until_ready(classifier_forward(x, params, n_classes=n_classes))
    ref = classifier_reference(x, params, n_classes)
    assert out.shape == (batch, n_classes)
    assert bool(jnp.allclose(out, ref, atol=3e-2)), float(jnp.max(jnp.abs(out - ref)))

    # --- binary (sigmoid) path: 2-layer MLP, n_classes <= 2 -> single logit ----
    n_layers2, n_classes2, batch2 = 2, 2, 64
    key, kx2, kp2 = jax.random.split(key, 3)
    x2 = jax.random.normal(kx2, (batch2, n_inputs), jnp.float32)
    params2 = init_classifier_params(kp2, n_layers2, n_inputs, n_hidden_units,
                                     n_classes2)
    out2 = jax.block_until_ready(classifier_forward(x2, params2,
                                                    n_classes=n_classes2))
    ref2 = classifier_reference(x2, params2, n_classes2)
    assert out2.shape == (batch2, 1)
    assert bool(jnp.allclose(out2, ref2, atol=3e-2)), float(jnp.max(jnp.abs(out2 - ref2)))

    print("KERNEL_OK")
</pallas_src>

<mosaic_0001>
module attributes {stable_mosaic.version = 11 : i64} {
  func.func @kernel(%arg0: i32, %arg1: memref<256x128xbf16, #tpu.memory_space<vmem>>, %arg2: memref<128x128xbf16, #tpu.memory_space<vmem>>, %arg3: memref<1x128xf32, #tpu.memory_space<vmem>>, %arg4: memref<128x128xbf16, #tpu.memory_space<vmem>>, %arg5: memref<1x128xf32, #tpu.memory_space<vmem>>, %arg6: memref<128x128xbf16, #tpu.memory_space<vmem>>, %arg7: memref<1x128xf32, #tpu.memory_space<vmem>>, %arg8: memref<256x128xf32, #tpu.memory_space<vmem>>) attributes {dimension_semantics = [#tpu.dimension_semantics<parallel>], iteration_bounds = array<i64: 2>, scalar_prefetch = 0 : i64, scratch_operands = 0 : i64, tpu.core_type = #tpu.core_type<tc>, window_params = [{transform_indices = @transform_0, window_bounds = array<i64: 256, 128>}, {pipeline_mode = #tpu.pipeline_mode<synchronous>, transform_indices = @transform_1, window_bounds = array<i64: 128, 128>}, {pipeline_mode = #tpu.pipeline_mode<synchronous>, transform_indices = @transform_2, window_bounds = array<i64: 1, 128>}, {pipeline_mode = #tpu.pipeline_mode<synchronous>, transform_indices = @transform_3, window_bounds = array<i64: 128, 128>}, {pipeline_mode = #tpu.pipeline_mode<synchronous>, transform_indices = @transform_4, window_bounds = array<i64: 1, 128>}, {pipeline_mode = #tpu.pipeline_mode<synchronous>, transform_indices = @transform_5, window_bounds = array<i64: 128, 128>}, {pipeline_mode = #tpu.pipeline_mode<synchronous>, transform_indices = @transform_6, window_bounds = array<i64: 1, 128>}, {transform_indices = @transform_7, window_bounds = array<i64: 256, 128>}]} {
    %c0 = arith.constant 0 : index
    %c0_0 = arith.constant 0 : index
    %0 = vector.load %arg1[%c0, %c0_0] : memref<256x128xbf16, #tpu.memory_space<vmem>>, vector<256x128xbf16>
    %c0_1 = arith.constant 0 : index
    %c0_2 = arith.constant 0 : index
    %1 = vector.load %arg2[%c0_1, %c0_2] : memref<128x128xbf16, #tpu.memory_space<vmem>>, vector<128x128xbf16>
    %c0_3 = arith.constant 0 : index
    %c0_4 = arith.constant 0 : index
    %2 = vector.load %arg3[%c0_3, %c0_4] : memref<1x128xf32, #tpu.memory_space<vmem>>, vector<1x128xf32>
    %cst = arith.constant dense<0.000000e+00> : vector<256x128xf32>
    %3 = tpu.matmul %0, %1, %cst {dimension_numbers = #tpu.dot_dimension_numbers<[1], [0], [0], [1], [0, 0, 1, 1], [], []>} : vector<256x128xbf16>, vector<128x128xbf16>, vector<256x128xf32> -> vector<256x128xf32>
    %4 = vector.broadcast %2 : vector<1x128xf32> to vector<256x128xf32>
    %5 = arith.addf %3, %4 : vector<256x128xf32>
    %cst_5 = arith.constant 0.000000e+00 : f32
    %6 = vector.broadcast %cst_5 : f32 to vector<256x128xf32>
    %7 = arith.maximumf %5, %6 : vector<256x128xf32>
    %8 = arith.truncf %7 : vector<256x128xf32> to vector<256x128xbf16>
    %c0_6 = arith.constant 0 : index
    %c0_7 = arith.constant 0 : index
    %9 = vector.load %arg4[%c0_6, %c0_7] : memref<128x128xbf16, #tpu.memory_space<vmem>>, vector<128x128xbf16>
    %c0_8 = arith.constant 0 : index
    %c0_9 = arith.constant 0 : index
    %10 = vector.load %arg5[%c0_8, %c0_9] : memref<1x128xf32, #tpu.memory_space<vmem>>, vector<1x128xf32>
    %cst_10 = arith.constant dense<0.000000e+00> : vector<256x128xf32>
    %11 = tpu.matmul %8, %9, %cst_10 {dimension_numbers = #tpu.dot_dimension_numbers<[1], [0], [0], [1], [0, 0, 1, 1], [], []>} : vector<256x128xbf16>, vector<128x128xbf16>, vector<256x128xf32> -> vector<256x128xf32>
    %12 = vector.broadcast %10 : vector<1x128xf32> to vector<256x128xf32>
    %13 = arith.addf %11, %12 : vector<256x128xf32>
    %cst_11 = arith.constant 0.000000e+00 : f32
    %14 = vector.broadcast %cst_11 : f32 to vector<256x128xf32>
    %15 = arith.maximumf %13, %14 : vector<256x128xf32>
    %16 = arith.truncf %15 : vector<256x128xf32> to vector<256x128xbf16>
    %c0_12 = arith.constant 0 : index
    %c0_13 = arith.constant 0 : index
    %17 = vector.load %arg6[%c0_12, %c0_13] : memref<128x128xbf16, #tpu.memory_space<vmem>>, vector<128x128xbf16>
    %c0_14 = arith.constant 0 : index
    %c0_15 = arith.constant 0 : index
    %18 = vector.load %arg7[%c0_14, %c0_15] : memref<1x128xf32, #tpu.memory_space<vmem>>, vector<1x128xf32>
    %cst_16 = arith.constant dense<0.000000e+00> : vector<256x128xf32>
    %19 = tpu.matmul %16, %17, %cst_16 {dimension_numbers = #tpu.dot_dimension_numbers<[1], [0], [0], [1], [0, 0, 1, 1], [], []>} : vector<256x128xbf16>, vector<128x128xbf16>, vector<256x128xf32> -> vector<256x128xf32>
    %20 = vector.broadcast %18 : vector<1x128xf32> to vector<256x128xf32>
    %21 = arith.addf %19, %20 : vector<256x128xf32>
    %cst_17 = arith.constant dense<0xFF800000> : vector<256xf32>
    %22 = vector.multi_reduction <maximumf>, %21, %cst_17 [1] : vector<256x128xf32> to vector<256xf32>
    %23 = vector.shape_cast %22 : vector<256xf32> to vector<256x1xf32>
    %24 = vector.broadcast %23 : vector<256x1xf32> to vector<256x128xf32>
    %25 = arith.subf %21, %24 : vector<256x128xf32>
    %26 = math.exp %25 : vector<256x128xf32>
    %cst_18 = arith.constant dense<0.000000e+00> : vector<256xf32>
    %27 = vector.multi_reduction <add>, %26, %cst_18 [1] : vector<256x128xf32> to vector<256xf32>
    %28 = vector.shape_cast %27 : vector<256xf32> to vector<256x1xf32>
    %29 = tpu.reciprocal %28 {approx = true} : vector<256x1xf32> -> vector<256x1xf32>
    %30 = vector.broadcast %29 : vector<256x1xf32> to vector<256x128xf32>
    %31 = arith.mulf %26, %30 : vector<256x128xf32>
    %c0_19 = arith.constant 0 : index
    %c0_20 = arith.constant 0 : index
    %32 = vector.load %arg8[%c0_19, %c0_20] : memref<256x128xf32, #tpu.memory_space<vmem>>, vector<256x128xf32>
    tpu.vector_store %arg8[%c0_19, %c0_20], %31 {strides = array<i32>} : memref<256x128xf32, #tpu.memory_space<vmem>>, vector<256x128xf32>,
    return
  }
  func.func @transform_0(%arg0: i32) -> (i32, i32) {
    %c0_i32 = arith.constant 0 : i32
    %c0_i32_0 = arith.constant 0 : i32
    return %arg0, %c0_i32 : i32, i32
  }
  func.func @transform_1(%arg0: i32) -> (i32, i32) {
    %c0_i32 = arith.constant 0 : i32
    %c0_i32_0 = arith.constant 0 : i32
    %c0_i32_1 = arith.constant 0 : i32
    return %c0_i32, %c0_i32_0 : i32, i32
  }
  func.func @transform_2(%arg0: i32) -> (i32, i32) {
    %c0_i32 = arith.constant 0 : i32
    %c0_i32_0 = arith.constant 0 : i32
    %c0_i32_1 = arith.constant 0 : i32
    return %c0_i32, %c0_i32_0 : i32, i32
  }
  func.func @transform_3(%arg0: i32) -> (i32, i32) {
    %c0_i32 = arith.constant 0 : i32
    %c0_i32_0 = arith.constant 0 : i32
    %c0_i32_1 = arith.constant 0 : i32
    return %c0_i32, %c0_i32_0 : i32, i32
  }
  func.func @transform_4(%arg0: i32) -> (i32, i32) {
    %c0_i32 = arith.constant 0 : i32
    %c0_i32_0 = arith.constant 0 : i32
    %c0_i32_1 = arith.constant 0 : i32
    return %c0_i32, %c0_i32_0 : i32, i32
  }
  func.func @transform_5(%arg0: i32) -> (i32, i32) {
    %c0_i32 = arith.constant 0 : i32
    %c0_i32_0 = arith.constant 0 : i32
    %c0_i32_1 = arith.constant 0 : i32
    return %c0_i32, %c0_i32_0 : i32, i32
  }
  func.func @transform_6(%arg0: i32) -> (i32, i32) {
    %c0_i32 = arith.constant 0 : i32
    %c0_i32_0 = arith.constant 0 : i32
    %c0_i32_1 = arith.constant 0 : i32
    return %c0_i32, %c0_i32_0 : i32, i32
  }
  func.func @transform_7(%arg0: i32) -> (i32, i32) {
    %c0_i32 = arith.constant 0 : i32
    %c0_i32_0 = arith.constant 0 : i32
    return %arg0, %c0_i32 : i32, i32
  }
}

</mosaic_0001>

<bundles_post_ra>
// kernel: tpu_custom_call.1
= control target key start
LH: loop header
LB: loop body
LE: loop exit
PB: predicated region body
PF: predicated region fallthrough
CT: control target
= control target key end

     0   :  { %12 = vsyncpa [#allocation3], 0  ;;  %s3189_s0 = inlined_call_operand.hbm [shape: bf16[512,128], index: 0, kind: input, shape index: {}]   ;;  %s3190_s1 = inlined_call_operand.hbm [shape: bf16[128,128], index: 1, kind: input, shape index: {}]   ;;  %s3191_s2 = inlined_call_operand.vmem [shape: f32[1,128], index: 2, kind: input, shape index: {}]   ;;  %s3192_s3 = inlined_call_operand.hbm [shape: bf16[128,128], index: 3, kind: input, shape index: {}]   ;;  %s3193_s4 = inlined_call_operand.vmem [shape: f32[1,128], index: 4, kind: input, shape index: {}]   ;;  %s3194_s5 = inlined_call_operand.hbm [shape: bf16[128,128], index: 5, kind: input, shape index: {}]   ;;  %s3195_s6 = inlined_call_operand.vmem [shape: f32[1,128], index: 6, kind: input, shape index: {}]   ;;  %s3196_s7 = inlined_call_operand.hbm [shape: f32[512,128], index: 7, kind: output, shape index: {}]  }
   0x1   :  { %14 = vsyncpa [#allocation3 + $0x1], 0 }
   0x2   :  { %15 = vsyncpa [#allocation6], 0 }
   0x3   :  { %16 = vsyncpa [#allocation9], 0 }
   0x4   :  { %17 = vsyncpa [#allocation4], 0 }
   0x5   :  { %19 = vsyncpa [#allocation4 + $0x1], 0  ;;  %s2485_s24 = smov 0   ;;  %s2487_s25 = smov 0  }
   0x6   :  { %s2489_s26 = smov 0   ;;  %s2491_s27 = smov 0  }
   0x7 LB: > { %s2506_s28 = sadd.s32 4294967295, %s2434_s27   ;;  %s1700_s29 = sadd.s32 4294967294, %s2434_s27   ;;  %s2434_s27 = sphi %s2491_s27, %s3222_s27   ;;  %s2430_s26 = sphi %s2489_s26, %s3221_s26   ;;  %s2426_s25 = sphi %s2487_s25, %s3220_s25   ;;  %s2422_s24 = sphi %s2485_s24, %s3219_s24  }
   0x8   : > { %p45_p0 = scmp.ne.s32.totalorder %s2426_s25, %s2422_s24  ;;  %p3197_p1 = scmp.eq.s32.totalorder %s2506_s28, 0 }
   0x9   : > { %p201_p3 = scmp.eq.s32.totalorder %s1700_s29, 1  ;;  %p1701_p5 = scmp.ge.s32.totalorder %s2434_s27, 1 }
   0xa   : > { %p2515_p4 = por %p3197_p1, %p45_p0  ;;  %p208_p7 = scmp.lt.s32.totalorder %s2434_s27, 3 }
   0xb   : > { %p2520_p6 = por %p201_p3, %p45_p0  ;;  %s2436_s10 = smov [#allocation5]  }
   0xc   : > { %s3201_s30 = scalar_select %p2515_p4, 1, 0 }
   0xd   : > { %s3202_s8 = scalar_select %p2520_p6, 1, 0 }
   0xe   : > { %p2525_p8 = pnand %p1701_p5, %p208_p7  ;;  %s220_s11 = sshll.u32 %s2436_s10, 4  ;;  %s2529_s11 = int_to_ptr.vmem [resolvable:$true] %s220_s11 }
   0xf   : > { %3203 = sst [smem:[#allocation15_spill]] %s3202_s8  ;;  %s2437_s13 = smov [#allocation7]  }
  0x10   : > { %s3204_s9 = scalar_select %p2525_p8, 1, 0 }
  0x11   : > { %p2013_p9 = pneg %p2525_p8  ;;  %s236_s14 = sshll.u32 %s2437_s13, 4  ;;  %s2540_s14 = int_to_ptr.vmem [resolvable:$true] %s236_s14 }
  0x12   : > { %s2438_s15 = smov [#allocation8]   ;;  %s2246_s19 = scalar_lea.hbm %s3190_s1, 1024 }
  0x13   : > { %p2536_p11 = pnand %p2013_p9, %p3197_p1  ;;  %s2542_s16 = sshll.u32 %s2438_s15, 4  ;;  %s253_s16 = int_to_ptr.vmem [resolvable:$true] %s2542_s16 }
  0x14   : > { %p2247_p12 = scmp.ne.s32.totalorder %s3190_s1, %s2246_s19  ;;  %p2253_p5 = scmp.lt.u32.totalorder %s2246_s19, %s3190_s1 }
  0x15   : > { %p2552_p13 = pneg %p2536_p11 }
  0x17   : > { %p2249_p0 = pnand %p2552_p13, %p2247_p12 }
  0x19   : > { %p2250_p3 = pneg %p2249_p0 }
  0x1b   : > { %p2255_p7 = pnand %p2253_p5, %p2250_p3 }
  0x1d   : > { %2258 = shalt.err (!%p2255_p7)
}
  0x1e   : > { %s2259_s10 = scalar_lea.vmem %s2529_s11, 1024  ;;  %p2267_p2 = scmp.lt.s32.totalorder %s2529_s11, %s2529_s11 }
  0x1f   : > { %p2260_p9 = scmp.ne.s32.totalorder %s2529_s11, %s2259_s10  ;;  %p2268_p6 = scmp.lt.s32.totalorder %s2259_s10, %s2259_s10 }
  0x21   : > { %p2262_p10 = pnand %p2260_p9, %p2552_p13  ;;  %p2269_p12 = por %p2268_p6, %p2267_p2 }
  0x23   : > { %p2263_p1 = pneg %p2262_p10 }
  0x25   : > { %p2270_p0 = pnand %p2269_p12, %p2263_p1 }
  0x27   : > { %2273 = shalt.err (!%p2270_p0)
}
  0x28   : > { %s2439_s13 = smov 64   ;;  %s2440_s15 = smov 4  }
  0x29   : > { %2016 = dma.hbm_to_vmem [thread:$0]  (!%p2536_p11), %s3190_s1, 1024, %s2529_s11, [#allocation6], %s2439_s13, %s2439_s13, %s2440_s15  }
  0x2a   : > { %s2274_s21 = scalar_lea.hbm %s3192_s3, 1024 }
  0x2b   : > { %p2275_p1 = scmp.ne.s32.totalorder %s3192_s3, %s2274_s21  ;;  %p2281_p10 = scmp.lt.u32.totalorder %s2274_s21, %s3192_s3 }
  0x2d   : > { %p2277_p2 = pnand %p2275_p1, %p2552_p13 }
  0x2f   : > { %p2278_p6 = pneg %p2277_p2 }
  0x31   : > { %p2283_p3 = pnand %p2281_p10, %p2278_p6 }
  0x33   : > { %2286 = shalt.err (!%p2283_p3)
}
  0x34   : > { %s2287_s11 = scalar_lea.vmem %s2540_s14, 1024  ;;  %p2295_p12 = scmp.lt.s32.totalorder %s2540_s14, %s2540_s14 }
  0x35   : > { %p2288_p5 = scmp.ne.s32.totalorder %s2540_s14, %s2287_s11  ;;  %p2296_p0 = scmp.lt.s32.totalorder %s2287_s11, %s2287_s11 }
  0x37   : > { %p2290_p7 = pnand %p2288_p5, %p2552_p13  ;;  %p2297_p1 = por %p2296_p0, %p2295_p12 }
  0x39   : > { %p2291_p9 = pneg %p2290_p7 }
  0x3b   : > { %p2298_p2 = pnand %p2297_p1, %p2291_p9 }
  0x3d   : > { %2301 = shalt.err (!%p2298_p2)
}
  0x3e   : > { %2019 = dma.hbm_to_vmem [thread:$0]  (!%p2536_p11), %s3192_s3, 1024, %s2540_s14, [#allocation6], %s2439_s13, %s2439_s13, %s2440_s15  }
  0x3f   : > { %s2302_s20 = scalar_lea.hbm %s3194_s5, 1024 }
  0x40   : > { %p2303_p6 = scmp.ne.s32.totalorder %s3194_s5, %s2302_s20  ;;  %p2309_p5 = scmp.lt.u32.totalorder %s2302_s20, %s3194_s5 }
  0x42   : > { %p2305_p10 = pnand %p2303_p6, %p2552_p13 }
  0x44   : > { %p2306_p3 = pneg %p2305_p10 }
  0x46   : > { %p2311_p7 = pnand %p2309_p5, %p2306_p3 }
  0x48   : > { %2314 = shalt.err (!%p2311_p7)
}
  0x49   : > { %s2315_s11 = scalar_lea.vmem %s253_s16, 1024  ;;  %p2323_p1 = scmp.lt.s32.totalorder %s253_s16, %s253_s16 }
  0x4a   : > { %p2316_p9 = scmp.ne.s32.totalorder %s253_s16, %s2315_s11  ;;  %p2324_p2 = scmp.lt.s32.totalorder %s2315_s11, %s2315_s11 }
  0x4c   : > { %p2318_p12 = pnand %p2316_p9, %p2552_p13  ;;  %p2325_p4 = por %p2324_p2, %p2323_p1 }
  0x4e   : > { %p2319_p0 = pneg %p2318_p12 }
  0x50   : > { %p2326_p8 = pnand %p2325_p4, %p2319_p0 }
  0x52   : > { %2329 = shalt.err (!%p2326_p8)
}
  0x53   : > { %2022 = dma.hbm_to_vmem [thread:$0]  (!%p2536_p11), %s3194_s5, 1024, %s253_s16, [#allocation9], %s2439_s13, %s2439_s13, %s2440_s15  }
  0x54   : > { %s2625_s22 = sadd.s32 1, %s2434_s27   ;;  %s32_s17 = sadd.s32 1, %s2430_s26 }
  0x55   : > { %s29_s12 = ssub.s32 %s2434_s27, %s2625_s22  ;;  %p39_p8 = scmp.ne.s32.totalorder %s2430_s26, %s2426_s25 }
  0x56   : > { %p30_p4 = scmp.eq.s32.totalorder %s29_s12, 0  ;;  %p40_p13 = scmp.eq.s32.totalorder %s2434_s27, 0 }
  0x57   : > { %p2034_p6 = scmp.lt.s32.totalorder %s2434_s27, 2  ;;  %p3207_p3 = scmp.eq.s32.totalorder %s2506_s28, 1 }
  0x58   : > { %s2635_s18 = scalar_select %p30_p4, %s2430_s26, %s32_s17  }
  0x59   : > { %p41_p10 = por %p40_p13, %p39_p8  ;;  %p2639_p5 = por %p3207_p3, %p39_p8 }
  0x5a   : > { %s269_s20 = sand.u32 1, %s2430_s26   ;;  %s1763_s21 = sshll.u32 %s2434_s27, 11 }
  0x5b   : > { %s1706_s16 = sshll.u32 %s269_s20, 7  ;;  %s2648_s10 = scalar_lea.hbm %s3189_s0, %s1763_s21 }
  0x5c   : > { %s273_s11 = scalar_lea.vmem [#allocation2], %s1706_s16  ;;  %p2650_p11 = pnand %p2034_p6, %p41_p10 }
  0x5d   : > { %s280_s14 = sshll.u32 %s273_s11, 4  ;;  %s2656_s12 = scalar_lea.sflag [#allocation3], %s269_s20  ;;  %s2654_s14 = int_to_ptr.vmem [resolvable:$true] %s280_s14 }
  0x5e   : > { %s2330_s17 = scalar_lea.hbm %s2648_s10, 2048  ;;  %p2332_p9 = pneg %p2650_p11 }
  0x5f   : > { %p2331_p7 = scmp.ne.s32.totalorder %s2648_s10, %s2330_s17  ;;  %s2335_s23 = scalar_lea.hbm %s3189_s0, 4096 }
  0x60   : > { %p2336_p1 = scmp.lt.u32.totalorder %s2648_s10, %s3189_s0  ;;  %p2337_p2 = scmp.lt.u32.totalorder %s2335_s23, %s2330_s17 }
  0x61   : > { %p2333_p12 = pnand %p2332_p9, %p2331_p7  ;;  %p2339_p8 = scmp.lt.u32.totalorder %s2330_s17, %s2648_s10 }
  0x62   : > { %p2338_p4 = por %p2337_p2, %p2336_p1 }
  0x63   : > { %p2334_p0 = pneg %p2333_p12 }
  0x64   : > { %p2340_p13 = por %p2339_p8, %p2338_p4 }
  0x66   : > { %p2341_p6 = pnand %p2340_p13, %p2334_p0 }
  0x68   : > { %2344 = shalt.err (!%p2341_p6)
}
  0x69   : > { %s2345_s20 = scalar_lea.vmem %s2654_s14, 2048  ;;  %s2441_s21 = smov [#allocation2]  }
  0x6a   : > { %p2346_p10 = scmp.ne.s32.totalorder %s2654_s14, %s2345_s20  ;;  %s2350_s16 = sshll.u32 %s2441_s21, 4  ;;  %s2351_s16 = int_to_ptr.vmem [resolvable:$false] %s2350_s16 }
  0x6b   : > { %s2352_s29 = scalar_lea.vmem %s2351_s16, 4096  ;;  %p2353_p12 = scmp.lt.s32.totalorder %s2654_s14, %s2351_s16 }
  0x6c   : > { %p2348_p3 = pnand %p2346_p10, %p2332_p9  ;;  %p2354_p1 = scmp.lt.s32.totalorder %s2352_s29, %s2345_s20 }
  0x6e   : > { %p2349_p7 = pneg %p2348_p3  ;;  %p2355_p2 = por %p2354_p1, %p2353_p12 }
  0x70   : > { %p2356_p4 = pnand %p2355_p2, %p2349_p7 }
  0x72   : > { %2359 = shalt.err (!%p2356_p4)
}
  0x73   : > { %2026 = dma.hbm_to_vmem [thread:$0]  (!%p2650_p11), %s2648_s10, 2048, %s2654_s14, %s2656_s12, %s2439_s13, %s2439_s13, %s2440_s15  }
  0x74   : > { %p3210_p9 = scmp.ne.s32.totalorder %s3204_s9, 0 }
  0x75   : > { %s2690_s17 = sand.u32 (!%p3210_p9), 1, %s2426_s25   ;;  %p3211_p0 = scmp.ne.s32.totalorder (!%p3210_p9), %s3201_s30, 0 }
  0x76   : > { %292 = sbr.rel (%p3210_p9) target bundleno = 1215 (0x4bf), region = 48  ;;  %s1710_s23 = sshll.u32 (!%p3210_p9), %s2690_s17, 7 }
  0x77   : > { %s295_s11 = scalar_lea.sflag (!%p3210_p9), [#allocation3], %s2690_s17  ;;  %s2694_s20 = scalar_lea.vmem (!%p3210_p9), [#allocation2], %s1710_s23 }
  0x7d   : > { %2405 = dma.done.wait (%p3211_p0), %s295_s11, 2048  }
  0x7e   : > { %2407 = vsyncadd (%p3211_p0), %s295_s11, 4294965248  ;;  %p3212_p11 = scmp.eq.s32.totalorder %s2506_s28, 0 }
  0x80   : > { %2409 = dma.done.wait (%p3212_p11), [#allocation6], 2048   ;;  %p3213_p8 = pmov %p3212_p11 }
  0x82   : > { %2411 = vsyncadd (%p3213_p8), [#allocation6], 4294965248  ;;  %p3214_p13 = pmov %p3213_p8 }
  0x83   : > { %p3215_p6 = pmov %p3213_p8 }
  0x84   : > { %2413 = dma.done.wait (%p3214_p13), [#allocation9], 1024  }
  0x85   : > { %2415 = vsyncadd (%p3215_p6), [#allocation9], 4294966272  ;;  %v2078_v0 = vld [vmem:[#allocation5] sm:$0xff]   ;;  %v2079_v1 = vld [vmem:[#allocation5 + $0x8] sm:$0xff]   ;;  %s1714_s8 = sshll.u32 %s2690_s17, 8  ;;  %s1764_s21 = sshll.u32 %s2506_s28, 12 }
  0x86   : > { %1837 = vmatprep.subr.bf16.mxu0 %v2078_v0  ;;  %1981 = vmatprep.subr.bf16.mxu1 %v2078_v0  ;;  %v2080_v2 = vld [vmem:[#allocation5 + $0x10] sm:$0xff]   ;;  %v2081_v3 = vld [vmem:[#allocation5 + $0x18] sm:$0xff]   ;;  %v2086_v4 = vld [vmem:[%s2694_s20] sm:$0xff]   ;;  %s3073_s12 = scalar_lea.vmem [#allocation10], %s1714_s8  ;;  %s3141_s11 = scalar_lea.hbm %s3196_s7, %s1764_s21 }
  0x87   : > { %1838 = vmatpush3.bf16.msra.mxu0 %v2078_v0  ;;  %1989 = vmatpush3.bf16.msra.mxu1 %v2078_v0  ;;  %v2082_v5 = vld [vmem:[#allocation5 + $0x20] sm:$0xff]   ;;  %v2083_v6 = vld [vmem:[#allocation5 + $0x28] sm:$0xff]   ;;  %v2084_v8 = vld [vmem:[#allocation5 + $0x30] sm:$0xff]   ;;  %s1598_s16 = sshll.u32 %s3073_s12, 4  ;;  %s1585_s28 = scalar_lea.sflag [#allocation4], %s2690_s17  ;;  %s3143_s16 = int_to_ptr.vmem [resolvable:$true] %s1598_s16 }
  0x88   : > { %1839 = vmatprep.subr.bf16.mxu0 %v2079_v1  ;;  %1982 = vmatprep.subr.bf16.mxu1 %v2079_v1  ;;  %v2094_v7 = vld [vmem:[%s2694_s20 + $0x40] sm:$0xff]   ;;  %v2085_v9 = vld [vmem:[#allocation5 + $0x38] sm:$0xff]   ;;  %v2087_v10 = vld [vmem:[%s2694_s20 + $0x8] sm:$0xff]   ;;  %s2442_s30 = smov [#allocation10]  }
  0x89   : > { %1853 = vmatprep.mubr.bf16.mxu0 %v2086_v4  ;;  %1869 = vmatprep.mubr.bf16.mxu1 %v2094_v7  ;;  %v2095_v11 = vld [vmem:[%s2694_s20 + $0x48] sm:$0xff]   ;;  %v2102_v12 = vld [vmem:[#allocation7] sm:$0xff]   ;;  %v2088_v13 = vld [vmem:[%s2694_s20 + $0x10] sm:$0xff]   ;;  %s2364_s9 = sshll.u32 %s2442_s30, 4  ;;  %s2365_s9 = int_to_ptr.vmem [resolvable:$false] %s2364_s9 }
  0x8a   : > { %v2096_v14 = vld [vmem:[%s2694_s20 + $0x50] sm:$0xff]   ;;  %v2103_v15 = vld [vmem:[#allocation7 + $0x8] sm:$0xff]   ;;  %v2089_v17 = vld [vmem:[%s2694_s20 + $0x18] sm:$0xff]   ;;  %s2366_s13 = scalar_lea.vmem %s2365_s9, 8192  ;;  %p2367_p12 = scmp.lt.s32.totalorder %s3143_s16, %s2365_s9 }
  0x8b   : > { %1840 = vmatpush3.bf16.msra.mxu0 %v2079_v1  ;;  %1990 = vmatpush3.bf16.msra.mxu1 %v2079_v1  ;;  %v2104_v16 = vld [vmem:[#allocation7 + $0x10] sm:$0xff]   ;;  %v2097_v18 = vld [vmem:[%s2694_s20 + $0x58] sm:$0xff]   ;;  %v2090_v19 = vld [vmem:[%s2694_s20 + $0x20] sm:$0xff]  }
  0x8c   : > { %1841 = vmatprep.subr.bf16.mxu0 %v2080_v2  ;;  %1983 = vmatprep.subr.bf16.mxu1 %v2080_v2  ;;  %v2098_v20 = vld [vmem:[%s2694_s20 + $0x60] sm:$0xff]   ;;  %v2105_v21 = vld [vmem:[#allocation7 + $0x18] sm:$0xff]   ;;  %v2091_v23 = vld [vmem:[%s2694_s20 + $0x28] sm:$0xff]  }
  0x8d   : > { %v2106_v22 = vld [vmem:[#allocation7 + $0x20] sm:$0xff]   ;;  %v2099_v24 = vld [vmem:[%s2694_s20 + $0x68] sm:$0xff]   ;;  %v2092_v25 = vld [vmem:[%s2694_s20 + $0x30] sm:$0xff]  }
  0x8e   : > { %v2100_v26 = vld [vmem:[%s2694_s20 + $0x70] sm:$0xff]   ;;  %v2107_v27 = vld [vmem:[#allocation7 + $0x28] sm:$0xff]   ;;  %v2093_v28 = vld [vmem:[%s2694_s20 + $0x38] sm:$0xff]  }
  0x8f   : > { %1842 = vmatpush3.bf16.msra.mxu0 %v2080_v2  ;;  %1991 = vmatpush3.bf16.msra.mxu1 %v2080_v2  ;;  %v2101_v29 = vld [vmem:[%s2694_s20 + $0x78] sm:$0xff]   ;;  %v2108_v30 = vld [vmem:[#allocation7 + $0x30] sm:$0xff]   ;;  %v2110_v32 = vld [vmem:[#allocation8] sm:$0xff]   ;;  %s2360_s20 = scalar_lea.vmem %s3143_s16, 4096 }
  0x90   : > { %1843 = vmatprep.subr.bf16.mxu0 %v2081_v3  ;;  %1984 = vmatprep.subr.bf16.mxu1 %v2081_v3  ;;  %v2109_v31 = vld [vmem:[#allocation7 + $0x38] sm:$0xff]   ;;  %v2111_v33 = vld [vmem:[#allocation8 + $0x8] sm:$0xff]   ;;  %v2112_v34 = vld [vmem:[#allocation8 + $0x10] sm:$0xff]   ;;  %p2361_p10 = scmp.ne.s32.totalorder %s3143_s16, %s2360_s20  ;;  %p2368_p1 = scmp.lt.s32.totalorder %s2366_s13, %s2360_s20 }
  0x91   : > { %v2113_v35 = vld [vmem:[#allocation8 + $0x18] sm:$0xff]   ;;  %v2114_v36 = vld [vmem:[#allocation8 + $0x20] sm:$0xff]   ;;  %v2115_v37 = vld [vmem:[#allocation8 + $0x28] sm:$0xff]  }
  0x92   : > { %v2727_v38 = vld [vmem:[%s3191_s2] ss:$0 sm:$0xff]  ;;  %p2362_p3 = pnand %p2361_p10, %p2639_p5  ;;  %p2369_p2 = por %p2368_p1, %p2367_p12 }
  0x93   : > { %1844 = vmatpush3.bf16.msra.mxu0 %v2081_v3  ;;  %1992 = vmatpush3.bf16.msra.mxu1 %v2081_v3 }
  0x94   : > { %1845 = vmatprep.subr.bf16.mxu0 %v2082_v5  ;;  %1985 = vmatprep.subr.bf16.mxu1 %v2082_v5  ;;  %p2363_p7 = pneg %p2362_p3 }
  0x96   : > { %p2370_p4 = pnand %p2369_p2, %p2363_p7 }
  0x97   : > { %1846 = vmatpush3.bf16.msra.mxu0 %v2082_v5  ;;  %1993 = vmatpush3.bf16.msra.mxu1 %v2082_v5 }
  0x98   : > { %1847 = vmatprep.subr.bf16.mxu0 %v2083_v6  ;;  %1986 = vmatprep.subr.bf16.mxu1 %v2083_v6 }
  0x9b   : > { %1848 = vmatpush3.bf16.msra.mxu0 %v2083_v6  ;;  %1994 = vmatpush3.bf16.msra.mxu1 %v2083_v6 }
  0x9c   : > { %1849 = vmatprep.subr.bf16.mxu0 %v2084_v8  ;;  %1987 = vmatprep.subr.bf16.mxu1 %v2084_v8 }
  0x9f   : > { %1850 = vmatpush3.bf16.msra.mxu0 %v2084_v8  ;;  %1995 = vmatpush3.bf16.msra.mxu1 %v2084_v8 }
  0xa0   : > { %1851 = vmatprep.subr.bf16.mxu0 %v2085_v9  ;;  %1988 = vmatprep.subr.bf16.mxu1 %v2085_v9 }
  0xa3   : > { %1852 = vmatpush3.bf16.msra.mxu0 %v2085_v9  ;;  %1996 = vmatpush3.bf16.msra.mxu1 %v2085_v9 }
  0xa4   : > { %1885 = vmatprep.subr.bf16.mxu1 %v2102_v12  ;;  %1933 = vmatprep.subr.bf16.mxu0 %v2110_v32 }
  0xa6   : > { %1854 = vmatmul.mubr.bf16.vlgmr.msra.gmra.mrb[0].mxu0 %v2087_v10  ;;  %1870 = vmatmul.mubr.bf16.vlgmr.msra.gmra.mrb[0].mxu1 %v2095_v11 }
  0xa7   : > { %1857 = vmatprep.mubr.bf16.mxu0 %v2088_v13  ;;  %1873 = vmatprep.mubr.bf16.mxu1 %v2096_v14 }
  0xa8   : > { %1886 = vmatpush3.bf16.msra.mxu1 %v2102_v12  ;;  %1934 = vmatpush3.bf16.msra.mxu0 %v2110_v32 }
  0xa9   : > { %1887 = vmatprep.subr.bf16.mxu1 %v2103_v15  ;;  %1935 = vmatprep.subr.bf16.mxu0 %v2111_v33 }
  0xac   : > { %1888 = vmatpush3.bf16.msra.mxu1 %v2103_v15  ;;  %1936 = vmatpush3.bf16.msra.mxu0 %v2111_v33 }
  0xad   : > { %1889 = vmatprep.subr.bf16.mxu1 %v2104_v16  ;;  %1937 = vmatprep.subr.bf16.mxu0 %v2112_v34 }
  0xae   : > { %1858 = vmatmul.mubr.bf16.gmra.mrb[4].mxu0 %v2089_v17  ;;  %1874 = vmatmul.mubr.bf16.gmra.mrb[4].mxu1 %v2097_v18 }
  0xaf   : > { %1861 = vmatprep.mubr.bf16.mxu0 %v2090_v19  ;;  %1877 = vmatprep.mubr.bf16.mxu1 %v2098_v20 }
  0xb0   : > { %1890 = vmatpush3.bf16.msra.mxu1 %v2104_v16  ;;  %1938 = vmatpush3.bf16.msra.mxu0 %v2112_v34 }
  0xb1   : > { %1891 = vmatprep.subr.bf16.mxu1 %v2105_v21  ;;  %1939 = vmatprep.subr.bf16.mxu0 %v2113_v35 }
  0xb4   : > { %1892 = vmatpush3.bf16.msra.mxu1 %v2105_v21  ;;  %1940 = vmatpush3.bf16.msra.mxu0 %v2113_v35 }
  0xb5   : > { %1893 = vmatprep.subr.bf16.mxu1 %v2106_v22  ;;  %1941 = vmatprep.subr.bf16.mxu0 %v2114_v36 }
  0xb6   : > { %1862 = vmatmul.mubr.bf16.gmra.mrb[8].mxu0 %v2091_v23  ;;  %1878 = vmatmul.mubr.bf16.gmra.mrb[8].mxu1 %v2099_v24 }
  0xb7   : > { %1865 = vmatprep.mubr.bf16.mxu0 %v2092_v25  ;;  %1881 = vmatprep.mubr.bf16.mxu1 %v2100_v26 }
  0xb8   : > { %1894 = vmatpush3.bf16.msra.mxu1 %v2106_v22  ;;  %1942 = vmatpush3.bf16.msra.mxu0 %v2114_v36 }
  0xb9   : > { %1895 = vmatprep.subr.bf16.mxu1 %v2107_v27  ;;  %1943 = vmatprep.subr.bf16.mxu0 %v2115_v37 }
  0xbc   : > { %1896 = vmatpush3.bf16.msra.mxu1 %v2107_v27  ;;  %1944 = vmatpush3.bf16.msra.mxu0 %v2115_v37 }
  0xbd   : > { %1897 = vmatprep.subr.bf16.mxu1 %v2108_v30 }
  0xbe   : > { %1866 = vmatmul.mubr.bf16.gmra.mrb[12].mxu0 %v2093_v28  ;;  %1882 = vmatmul.mubr.bf16.gmra.mrb[12].mxu1 %v2101_v29 }
  0xc0   : > { %1898 = vmatpush3.bf16.msra.mxu1 %v2108_v30 }
  0xc1   : > { %1899 = vmatprep.subr.bf16.mxu1 %v2109_v31 }
  0xc4   : > { %1900 = vmatpush3.bf16.msra.mxu1 %v2109_v31 }
 0x179   : > { %v1855_v39 = vpop.f32.mrb[0].mxu0  ;;  %v1871_v40 = vpop.f32.mrb[0].mxu1 }
 0x17a   : > { %v586_v41 = vadd.f32 %v1855_v39, %v2727_v38  ;;  %v577_v42 = vpop.f32.mrb[1].mxu0  ;;  %v650_v43 = vadd.f32 %v1871_v40, %v2727_v38  ;;  %v641_v44 = vpop.f32.mrb[1].mxu1 }
 0x17b   : > { %v578_v45 = vadd.f32 %v2727_v38, %v577_v42  ;;  %v1856_v46 = vpop.f32.mrb[2].mxu0  ;;  %v642_v47 = vadd.f32 %v2727_v38, %v641_v44  ;;  %v1872_v48 = vpop.f32.mrb[2].mxu1 }
 0x17c   : > { %v589_v49 = vadd.f32 %v1856_v46, %v2727_v38  ;;  %v580_v50 = vpop.f32.mrb[3].mxu0  ;;  %v722_v51 = vmax.f32 %v650_v43, 0.0  ;;  %v653_v52 = vadd.f32 %v1872_v48, %v2727_v38  ;;  %v644_v53 = vpop.f32.mrb[3].mxu1  ;;  %v706_v57 = vmax.f32 %v586_v41, 0.0 }
 0x17d   : > { %v581_v54 = vadd.f32 %v2727_v38, %v580_v50  ;;  %v720_v55 = vmax.f32 %v642_v47, 0.0  ;;  %v645_v56 = vadd.f32 %v2727_v38, %v644_v53  ;;  %v704_v60 = vmax.f32 %v578_v45, 0.0 }
 0x17e   : > { %v707_v58 = vmax.f32 %v589_v49, 0.0  ;;  %v723_v59 = vmax.f32 %v653_v52, 0.0 }
 0x17f   : > { %v705_v61 = vmax.f32 %v581_v54, 0.0  ;;  %v721_v62 = vmax.f32 %v645_v56, 0.0 }
 0x180   : > { %v737_v63 = vpack.c.bf16 %v707_v58, %v706_v57  ;;  %v2737_v0 = vpack.c.bf16 %v723_v59, %v722_v51 }
 0x181   : > { %v736_v1 = vpack.c.bf16 %v705_v61, %v704_v60  ;;  %v1859_v2 = vpop.f32.mrb[4].mxu0  ;;  %v2739_v3 = vpack.c.bf16 %v721_v62, %v720_v55  ;;  %v1875_v4 = vpop.f32.mrb[4].mxu1 }
 0x182   : > { %v602_v5 = vadd.f32 %v1859_v2, %v2727_v38  ;;  %v593_v6 = vpop.f32.mrb[5].mxu0  ;;  %v666_v7 = vadd.f32 %v1875_v4, %v2727_v38  ;;  %v657_v8 = vpop.f32.mrb[5].mxu1 }
 0x183   : > { %v594_v9 = vadd.f32 %v2727_v38, %v593_v6  ;;  %v1860_v10 = vpop.f32.mrb[6].mxu0  ;;  %1901 = vmatprep.mubr.bf16.mxu1 %v736_v1  ;;  %v658_v11 = vadd.f32 %v2727_v38, %v657_v8  ;;  %v1876_v12 = vpop.f32.mrb[6].mxu1 }
 0x184   : > { %v710_v13 = vmax.f32 %v602_v5, 0.0  ;;  %v605_v14 = vadd.f32 %v1860_v10, %v2727_v38  ;;  %v596_v15 = vpop.f32.mrb[7].mxu0  ;;  %1902 = vmatmul.mubr.bf16.vlgmr.msra.gmra.mrb[16].mxu1 %v737_v63  ;;  %v726_v16 = vmax.f32 %v666_v7, 0.0  ;;  %v669_v17 = vadd.f32 %v1876_v12, %v2727_v38  ;;  %v660_v18 = vpop.f32.mrb[7].mxu1 }
 0x185   : > { %v597_v19 = vadd.f32 %v2727_v38, %v596_v15  ;;  %v724_v20 = vmax.f32 %v658_v11, 0.0  ;;  %v661_v21 = vadd.f32 %v2727_v38, %v660_v18  ;;  %v708_v24 = vmax.f32 %v594_v9, 0.0 }
 0x186   : > { %v711_v22 = vmax.f32 %v605_v14, 0.0  ;;  %v727_v23 = vmax.f32 %v669_v17, 0.0 }
 0x187   : > { %v709_v25 = vmax.f32 %v597_v19, 0.0  ;;  %v725_v26 = vmax.f32 %v661_v21, 0.0 }
 0x188   : > { %v739_v27 = vpack.c.bf16 %v711_v22, %v710_v13  ;;  %v2749_v28 = vpack.c.bf16 %v727_v23, %v726_v16 }
 0x189   : > { %v738_v29 = vpack.c.bf16 %v709_v25, %v708_v24  ;;  %v1863_v30 = vpop.f32.mrb[8].mxu0  ;;  %v2751_v31 = vpack.c.bf16 %v725_v26, %v724_v20  ;;  %v1879_v32 = vpop.f32.mrb[8].mxu1  ;;  %v2117_v26 = vld [vmem:[#allocation8 + $0x38] sm:$0xff]  }
 0x18a   : > { %v618_v33 = vadd.f32 %v1863_v30, %v2727_v38  ;;  %v609_v34 = vpop.f32.mrb[9].mxu0  ;;  %v682_v35 = vadd.f32 %v1879_v32, %v2727_v38  ;;  %v673_v36 = vpop.f32.mrb[9].mxu1 }
 0x18b   : > { %v610_v37 = vadd.f32 %v2727_v38, %v609_v34  ;;  %v1864_v39 = vpop.f32.mrb[10].mxu0  ;;  %1905 = vmatprep.mubr.bf16.mxu1 %v738_v29  ;;  %v674_v40 = vadd.f32 %v2727_v38, %v673_v36  ;;  %v1880_v41 = vpop.f32.mrb[10].mxu1 }
 0x18c   : > { %v714_v42 = vmax.f32 %v618_v33, 0.0  ;;  %v621_v43 = vadd.f32 %v1864_v39, %v2727_v38  ;;  %v612_v44 = vpop.f32.mrb[11].mxu0  ;;  %1906 = vmatmul.mubr.bf16.gmra.mrb[20].mxu1 %v739_v27  ;;  %v730_v45 = vmax.f32 %v682_v35, 0.0  ;;  %v685_v46 = vadd.f32 %v1880_v41, %v2727_v38  ;;  %v676_v47 = vpop.f32.mrb[11].mxu1 }
 0x18d   : > { %v613_v48 = vadd.f32 %v2727_v38, %v612_v44  ;;  %v728_v49 = vmax.f32 %v674_v40, 0.0  ;;  %v677_v50 = vadd.f32 %v2727_v38, %v676_v47  ;;  %v712_v53 = vmax.f32 %v610_v37, 0.0 }
 0x18e   : > { %v715_v51 = vmax.f32 %v621_v43, 0.0  ;;  %v731_v52 = vmax.f32 %v685_v46, 0.0 }
 0x18f   : > { %v713_v54 = vmax.f32 %v613_v48, 0.0  ;;  %v729_v55 = vmax.f32 %v677_v50, 0.0 }
 0x190   : > { %v741_v56 = vpack.c.bf16 %v715_v51, %v714_v42  ;;  %v749_v57 = vpack.c.bf16 %v731_v52, %v730_v45 }
 0x191   : > { %v740_v58 = vpack.c.bf16 %v713_v54, %v712_v53  ;;  %v1867_v59 = vpop.f32.mrb[12].mxu0  ;;  %v748_v60 = vpack.c.bf16 %v729_v55, %v728_v49  ;;  %v1883_v61 = vpop.f32.mrb[12].mxu1 }
 0x192   : > { %v634_v62 = vadd.f32 %v1867_v59, %v2727_v38  ;;  %v625_v63 = vpop.f32.mrb[13].mxu0  ;;  %v698_v1 = vadd.f32 %v1883_v61, %v2727_v38  ;;  %v689_v2 = vpop.f32.mrb[13].mxu1 }
 0x193   : > { %v626_v4 = vadd.f32 %v2727_v38, %v625_v63  ;;  %v1868_v5 = vpop.f32.mrb[14].mxu0  ;;  %1909 = vmatprep.mubr.bf16.mxu1 %v740_v58  ;;  %v690_v6 = vadd.f32 %v2727_v38, %v689_v2  ;;  %v1884_v7 = vpop.f32.mrb[14].mxu1 }
 0x194   : > { %v718_v8 = vmax.f32 %v634_v62, 0.0  ;;  %v637_v9 = vadd.f32 %v1868_v5, %v2727_v38  ;;  %v628_v10 = vpop.f32.mrb[15].mxu0  ;;  %1910 = vmatmul.mubr.bf16.gmra.mrb[24].mxu1 %v741_v56  ;;  %v734_v11 = vmax.f32 %v698_v1, 0.0  ;;  %v701_v12 = vadd.f32 %v1884_v7, %v2727_v38  ;;  %v692_v13 = vpop.f32.mrb[15].mxu1 }
 0x195   : > { %v629_v14 = vadd.f32 %v2727_v38, %v628_v10  ;;  %v732_v15 = vmax.f32 %v690_v6, 0.0  ;;  %v693_v16 = vadd.f32 %v2727_v38, %v692_v13  ;;  %v716_v19 = vmax.f32 %v626_v4, 0.0  ;;  %v2116_v38 = vld [vmem:[#allocation8 + $0x30] sm:$0xff]  }
 0x196   : > { %v719_v17 = vmax.f32 %v637_v9, 0.0  ;;  %v735_v18 = vmax.f32 %v701_v12, 0.0  ;;  %1945 = vmatprep.subr.bf16.mxu0 %v2116_v38 }
 0x197   : > { %v717_v20 = vmax.f32 %v629_v14, 0.0  ;;  %v733_v21 = vmax.f32 %v693_v16, 0.0  ;;  %1946 = vmatpush3.bf16.msra.mxu0 %v2116_v38 }
 0x198   : > { %v743_v22 = vpack.c.bf16 %v719_v17, %v718_v8  ;;  %v751_v23 = vpack.c.bf16 %v735_v18, %v734_v11  ;;  %1947 = vmatprep.subr.bf16.mxu0 %v2117_v26 }
 0x199   : > { %v742_v24 = vpack.c.bf16 %v717_v20, %v716_v19  ;;  %v750_v25 = vpack.c.bf16 %v733_v21, %v732_v15 }
 0x19b   : > { %1913 = vmatprep.mubr.bf16.mxu1 %v742_v24  ;;  %1948 = vmatpush3.bf16.msra.mxu0 %v2117_v26 }
 0x19c   : > { %1914 = vmatmul.mubr.bf16.gmra.mrb[28].mxu1 %v743_v22 }
 0x19d   : > { %1917 = vmatprep.mubr.bf16.mxu1 %v2739_v3  ;;  %v2776_v3 = vld [vmem:[%s3193_s4] ss:$0 sm:$0xff] }
 0x1a4   : > { %1918 = vmatmul.mubr.bf16.gmra.mrb[32].mxu1 %v2737_v0 }
 0x1a5   : > { %1921 = vmatprep.mubr.bf16.mxu1 %v2751_v31 }
 0x1ac   : > { %1922 = vmatmul.mubr.bf16.gmra.mrb[36].mxu1 %v2749_v28 }
 0x1ad   : > { %1925 = vmatprep.mubr.bf16.mxu1 %v748_v60 }
 0x1b4   : > { %1926 = vmatmul.mubr.bf16.gmra.mrb[40].mxu1 %v749_v57 }
 0x1b5   : > { %1929 = vmatprep.mubr.bf16.mxu1 %v750_v25 }
 0x1bc   : > { %1930 = vmatmul.mubr.bf16.gmra.mrb[44].mxu1 %v751_v23 }
 0x257   : > { %v1903_v0 = vpop.f32.mrb[16].mxu1 }
 0x258   : > { %v866_v27 = vadd.f32 %v1903_v0, %v2776_v3  ;;  %v857_v29 = vpop.f32.mrb[17].mxu1 }
 0x259   : > { %v858_v28 = vadd.f32 %v2776_v3, %v857_v29  ;;  %v1904_v30 = vpop.f32.mrb[18].mxu1 }
 0x25a   : > { %v869_v31 = vadd.f32 %v1904_v30, %v2776_v3  ;;  %v860_v32 = vpop.f32.mrb[19].mxu1  ;;  %v986_v34 = vmax.f32 %v866_v27, 0.0 }
 0x25b   : > { %v861_v33 = vadd.f32 %v2776_v3, %v860_v32  ;;  %v984_v36 = vmax.f32 %v858_v28, 0.0 }
 0x25c   : > { %v987_v35 = vmax.f32 %v869_v31, 0.0 }
 0x25d   : > { %v985_v37 = vmax.f32 %v861_v33, 0.0 }
 0x25e   : > { %v1017_v39 = vpack.c.bf16 %v987_v35, %v986_v34 }
 0x25f   : > { %v1016_v40 = vpack.c.bf16 %v985_v37, %v984_v36  ;;  %v1907_v41 = vpop.f32.mrb[20].mxu1 }
 0x260   : > { %v882_v42 = vadd.f32 %v1907_v41, %v2776_v3  ;;  %v873_v43 = vpop.f32.mrb[21].mxu1 }
 0x261   : > { %v874_v44 = vadd.f32 %v2776_v3, %v873_v43  ;;  %v1908_v45 = vpop.f32.mrb[22].mxu1  ;;  %1949 = vmatprep.mubr.bf16.mxu0 %v1016_v40 }
 0x262   : > { %v885_v46 = vadd.f32 %v1908_v45, %v2776_v3  ;;  %v876_v47 = vpop.f32.mrb[23].mxu1  ;;  %1950 = vmatmul.mubr.bf16.vlgmr.msra.gmra.mrb[16].mxu0 %v1017_v39  ;;  %v990_v49 = vmax.f32 %v882_v42, 0.0 }
 0x263   : > { %v877_v48 = vadd.f32 %v2776_v3, %v876_v47  ;;  %v988_v51 = vmax.f32 %v874_v44, 0.0 }
 0x264   : > { %v991_v50 = vmax.f32 %v885_v46, 0.0 }
 0x265   : > { %v989_v52 = vmax.f32 %v877_v48, 0.0 }
 0x266   : > { %v1019_v53 = vpack.c.bf16 %v991_v50, %v990_v49 }
 0x267   : > { %v1018_v54 = vpack.c.bf16 %v989_v52, %v988_v51  ;;  %v1911_v55 = vpop.f32.mrb[24].mxu1 }
 0x268   : > { %v898_v56 = vadd.f32 %v1911_v55, %v2776_v3  ;;  %v889_v57 = vpop.f32.mrb[25].mxu1 }
 0x269   : > { %v890_v58 = vadd.f32 %v2776_v3, %v889_v57  ;;  %v1912_v59 = vpop.f32.mrb[26].mxu1  ;;  %1953 = vmatprep.mubr.bf16.mxu0 %v1018_v54 }
 0x26a   : > { %v901_v60 = vadd.f32 %v1912_v59, %v2776_v3  ;;  %v892_v61 = vpop.f32.mrb[27].mxu1  ;;  %1954 = vmatmul.mubr.bf16.gmra.mrb[20].mxu0 %v1019_v53  ;;  %v994_v63 = vmax.f32 %v898_v56, 0.0 }
 0x26b   : > { %v893_v62 = vadd.f32 %v2776_v3, %v892_v61  ;;  %v992_v2 = vmax.f32 %v890_v58, 0.0 }
 0x26c   : > { %v995_v1 = vmax.f32 %v901_v60, 0.0 }
 0x26d   : > { %v993_v4 = vmax.f32 %v893_v62, 0.0 }
 0x26e   : > { %v1021_v5 = vpack.c.bf16 %v995_v1, %v994_v63 }
 0x26f   : > { %v1020_v6 = vpack.c.bf16 %v993_v4, %v992_v2  ;;  %v1915_v7 = vpop.f32.mrb[28].mxu1 }
 0x270   : > { %v914_v8 = vadd.f32 %v1915_v7, %v2776_v3  ;;  %v905_v9 = vpop.f32.mrb[29].mxu1 }
 0x271   : > { %v906_v10 = vadd.f32 %v2776_v3, %v905_v9  ;;  %v1916_v11 = vpop.f32.mrb[30].mxu1  ;;  %1957 = vmatprep.mubr.bf16.mxu0 %v1020_v6 }
 0x272   : > { %v917_v12 = vadd.f32 %v1916_v11, %v2776_v3  ;;  %v908_v13 = vpop.f32.mrb[31].mxu1  ;;  %1958 = vmatmul.mubr.bf16.gmra.mrb[24].mxu0 %v1021_v5  ;;  %v998_v15 = vmax.f32 %v914_v8, 0.0 }
 0x273   : > { %v909_v14 = vadd.f32 %v2776_v3, %v908_v13  ;;  %v996_v17 = vmax.f32 %v906_v10, 0.0 }
 0x274   : > { %v999_v16 = vmax.f32 %v917_v12, 0.0 }
 0x275   : > { %v997_v18 = vmax.f32 %v909_v14, 0.0  ;;  %v2813_v14 = vld [vmem:[%s3195_s6] ss:$0 sm:$0xff] }
 0x276   : > { %v1023_v19 = vpack.c.bf16 %v999_v16, %v998_v15 }
 0x277   : > { %v1022_v20 = vpack.c.bf16 %v997_v18, %v996_v17  ;;  %v1919_v21 = vpop.f32.mrb[32].mxu1 }
 0x278   : > { %v930_v22 = vadd.f32 %v1919_v21, %v2776_v3  ;;  %v921_v23 = vpop.f32.mrb[33].mxu1 }
 0x279   : > { %v922_v24 = vadd.f32 %v2776_v3, %v921_v23  ;;  %v1920_v25 = vpop.f32.mrb[34].mxu1  ;;  %1961 = vmatprep.mubr.bf16.mxu0 %v1022_v20 }
 0x27a   : > { %v933_v38 = vadd.f32 %v1920_v25, %v2776_v3  ;;  %v924_v26 = vpop.f32.mrb[35].mxu1  ;;  %1962 = vmatmul.mubr.bf16.gmra.mrb[28].mxu0 %v1023_v19  ;;  %v1002_v27 = vmax.f32 %v930_v22, 0.0 }
 0x27b   : > { %v925_v0 = vadd.f32 %v2776_v3, %v924_v26  ;;  %v1000_v28 = vmax.f32 %v922_v24, 0.0 }
 0x27c   : > { %v1003_v29 = vmax.f32 %v933_v38, 0.0 }
 0x27d   : > { %v1001_v30 = vmax.f32 %v925_v0, 0.0 }
 0x27e   : > { %v1025_v31 = vpack.c.bf16 %v1003_v29, %v1002_v27 }
 0x27f   : > { %v1024_v32 = vpack.c.bf16 %v1001_v30, %v1000_v28  ;;  %v1923_v33 = vpop.f32.mrb[36].mxu1 }
 0x280   : > { %v946_v34 = vadd.f32 %v1923_v33, %v2776_v3  ;;  %v937_v35 = vpop.f32.mrb[37].mxu1 }
 0x281   : > { %v938_v36 = vadd.f32 %v2776_v3, %v937_v35  ;;  %v1924_v37 = vpop.f32.mrb[38].mxu1  ;;  %1965 = vmatprep.mubr.bf16.mxu0 %v1024_v32 }
 0x282   : > { %v949_v39 = vadd.f32 %v1924_v37, %v2776_v3  ;;  %v940_v40 = vpop.f32.mrb[39].mxu1  ;;  %1966 = vmatmul.mubr.bf16.gmra.mrb[32].mxu0 %v1025_v31  ;;  %v1006_v42 = vmax.f32 %v946_v34, 0.0 }
 0x283   : > { %v941_v41 = vadd.f32 %v2776_v3, %v940_v40  ;;  %v1004_v44 = vmax.f32 %v938_v36, 0.0 }
 0x284   : > { %v1007_v43 = vmax.f32 %v949_v39, 0.0 }
 0x285   : > { %v1005_v45 = vmax.f32 %v941_v41, 0.0 }
 0x286   : > { %v1027_v46 = vpack.c.bf16 %v1007_v43, %v1006_v42 }
 0x287   : > { %v1026_v47 = vpack.c.bf16 %v1005_v45, %v1004_v44  ;;  %v1927_v48 = vpop.f32.mrb[40].mxu1 }
 0x288   : > { %v962_v49 = vadd.f32 %v1927_v48, %v2776_v3  ;;  %v953_v50 = vpop.f32.mrb[41].mxu1 }
 0x289   : > { %v954_v51 = vadd.f32 %v2776_v3, %v953_v50  ;;  %v1928_v52 = vpop.f32.mrb[42].mxu1  ;;  %1969 = vmatprep.mubr.bf16.mxu0 %v1026_v47 }
 0x28a   : > { %v965_v53 = vadd.f32 %v1928_v52, %v2776_v3  ;;  %v956_v54 = vpop.f32.mrb[43].mxu1  ;;  %1970 = vmatmul.mubr.bf16.gmra.mrb[36].mxu0 %v1027_v46  ;;  %v1010_v56 = vmax.f32 %v962_v49, 0.0 }
 0x28b   : > { %v957_v55 = vadd.f32 %v2776_v3, %v956_v54  ;;  %v1008_v58 = vmax.f32 %v954_v51, 0.0 }
 0x28c   : > { %v1011_v57 = vmax.f32 %v965_v53, 0.0 }
 0x28d   : > { %v1009_v59 = vmax.f32 %v957_v55, 0.0 }
 0x28e   : > { %v1029_v60 = vpack.c.bf16 %v1011_v57, %v1010_v56 }
 0x28f   : > { %v1028_v61 = vpack.c.bf16 %v1009_v59, %v1008_v58  ;;  %v1931_v62 = vpop.f32.mrb[44].mxu1 }
 0x290   : > { %v978_v63 = vadd.f32 %v1931_v62, %v2776_v3  ;;  %v969_v1 = vpop.f32.mrb[45].mxu1 }
 0x291   : > { %v970_v2 = vadd.f32 %v2776_v3, %v969_v1  ;;  %v1932_v4 = vpop.f32.mrb[46].mxu1  ;;  %1973 = vmatprep.mubr.bf16.mxu0 %v1028_v61 }
 0x292   : > { %v981_v5 = vadd.f32 %v1932_v4, %v2776_v3  ;;  %v972_v6 = vpop.f32.mrb[47].mxu1  ;;  %1974 = vmatmul.mubr.bf16.gmra.mrb[40].mxu0 %v1029_v60  ;;  %v1014_v8 = vmax.f32 %v978_v63, 0.0 }
 0x293   : > { %v973_v7 = vadd.f32 %v2776_v3, %v972_v6  ;;  %v1012_v10 = vmax.f32 %v970_v2, 0.0 }
 0x294   : > { %v1015_v9 = vmax.f32 %v981_v5, 0.0 }
 0x295   : > { %v1013_v11 = vmax.f32 %v973_v7, 0.0 }
 0x296   : > { %v1031_v12 = vpack.c.bf16 %v1015_v9, %v1014_v8 }
 0x297   : > { %v1030_v13 = vpack.c.bf16 %v1013_v11, %v1012_v10 }
 0x299   : > { %1977 = vmatprep.mubr.bf16.mxu0 %v1030_v13 }
 0x29a   : > { %1978 = vmatmul.mubr.bf16.gmra.mrb[44].mxu0 %v1031_v12 }
 0x335   : > { %v1951_v15 = vpop.f32.mrb[16].mxu0 }
 0x336   : > { %v2816_v16 = vadd.f32 %v1951_v15, %v2813_v14  ;;  %v1137_v17 = vpop.f32.mrb[17].mxu0 }
 0x337   : > { %v2819_v3 = vadd.f32 %v2813_v14, %v1137_v17  ;;  %v1952_v18 = vpop.f32.mrb[18].mxu0 }
 0x338   : > { %1268 = vmax.xlane.f32.xlu1 %v2816_v16  ;;  %v1140_v19 = vpop.f32.mrb[19].mxu0  ;;  %v2824_v20 = vadd.f32 %v1952_v18, %v2813_v14 }
 0x339   : > { %1264 = vmax.xlane.f32.xlu0 %v2819_v3  ;;  %v2827_v21 = vadd.f32 %v2813_v14, %v1140_v19 }
 0x33c   : > { %1270 = vmax.xlane.f32.xlu1 %v2824_v20 }
 0x33d   : > { %v1955_v22 = vpop.f32.mrb[20].mxu0  ;;  %1266 = vmax.xlane.f32.xlu0 %v2827_v21 }
 0x33e   : > { %v2832_v23 = vadd.f32 %v1955_v22, %v2813_v14  ;;  %v1153_v24 = vpop.f32.mrb[21].mxu0 }
 0x33f   : > { %v1956_v25 = vpop.f32.mrb[22].mxu0  ;;  %v2840_v0 = vadd.f32 %v2813_v14, %v1153_v24 }
 0x340   : > { %v2835_v38 = vadd.f32 %v1956_v25, %v2813_v14  ;;  %v1156_v26 = vpop.f32.mrb[23].mxu0 }
 0x341   : > { %1276 = vmax.xlane.f32.xlu0 %v2832_v23  ;;  %v2843_v27 = vadd.f32 %v2813_v14, %v1156_v26 }
 0x342   : > { %1278 = vmax.xlane.f32.xlu1 %v2835_v38 }
 0x345   : > { %v1959_v29 = vpop.f32.mrb[24].mxu0  ;;  %1272 = vmax.xlane.f32.xlu0 %v2840_v0 }
 0x346   : > { %v2847_v28 = vadd.f32 %v1959_v29, %v2813_v14  ;;  %v1169_v30 = vpop.f32.mrb[25].mxu0  ;;  %1274 = vmax.xlane.f32.xlu1 %v2843_v27 }
 0x347   : > { %v1960_v31 = vpop.f32.mrb[26].mxu0  ;;  %v2856_v34 = vadd.f32 %v2813_v14, %v1169_v30 }
 0x348   : > { %v2851_v32 = vadd.f32 %v1960_v31, %v2813_v14  ;;  %v1172_v33 = vpop.f32.mrb[27].mxu0 }
 0x349   : > { %1284 = vmax.xlane.f32.xlu0 %v2847_v28  ;;  %v2859_v35 = vadd.f32 %v2813_v14, %v1172_v33 }
 0x34a   : > { %1286 = vmax.xlane.f32.xlu1 %v2851_v32 }
 0x34d   : > { %v1963_v36 = vpop.f32.mrb[28].mxu0  ;;  %1280 = vmax.xlane.f32.xlu0 %v2856_v34 }
 0x34e   : > { %v2863_v37 = vadd.f32 %v1963_v36, %v2813_v14  ;;  %v1185_v39 = vpop.f32.mrb[29].mxu0  ;;  %1282 = vmax.xlane.f32.xlu1 %v2859_v35 }
 0x34f   : > { %v1964_v40 = vpop.f32.mrb[30].mxu0  ;;  %v2872_v43 = vadd.f32 %v2813_v14, %v1185_v39 }
 0x350   : > { %v2867_v41 = vadd.f32 %v1964_v40, %v2813_v14  ;;  %v1188_v42 = vpop.f32.mrb[31].mxu0 }
 0x351   : > { %1292 = vmax.xlane.f32.xlu0 %v2863_v37  ;;  %v2875_v44 = vadd.f32 %v2813_v14, %v1188_v42 }
 0x352   : > { %1294 = vmax.xlane.f32.xlu1 %v2867_v41 }
 0x355   : > { %v1967_v45 = vpop.f32.mrb[32].mxu0  ;;  %1288 = vmax.xlane.f32.xlu0 %v2872_v43 }
 0x356   : > { %v2879_v46 = vadd.f32 %v1967_v45, %v2813_v14  ;;  %v1201_v47 = vpop.f32.mrb[33].mxu0  ;;  %1290 = vmax.xlane.f32.xlu1 %v2875_v44 }
 0x357   : > { %v1968_v48 = vpop.f32.mrb[34].mxu0  ;;  %v2888_v51 = vadd.f32 %v2813_v14, %v1201_v47 }
 0x358   : > { %v2883_v49 = vadd.f32 %v1968_v48, %v2813_v14  ;;  %v1204_v50 = vpop.f32.mrb[35].mxu0 }
 0x359   : > { %1300 = vmax.xlane.f32.xlu0 %v2879_v46  ;;  %v2891_v52 = vadd.f32 %v2813_v14, %v1204_v50 }
 0x35a   : > { %1302 = vmax.xlane.f32.xlu1 %v2883_v49 }
 0x35d   : > { %v1971_v53 = vpop.f32.mrb[36].mxu0  ;;  %1296 = vmax.xlane.f32.xlu0 %v2888_v51 }
 0x35e   : > { %v2895_v54 = vadd.f32 %v1971_v53, %v2813_v14  ;;  %v1217_v55 = vpop.f32.mrb[37].mxu0  ;;  %1298 = vmax.xlane.f32.xlu1 %v2891_v52 }
 0x35f   : > { %v1972_v56 = vpop.f32.mrb[38].mxu0  ;;  %v2904_v59 = vadd.f32 %v2813_v14, %v1217_v55 }
 0x360   : > { %v2899_v57 = vadd.f32 %v1972_v56, %v2813_v14  ;;  %v1220_v58 = vpop.f32.mrb[39].mxu0 }
 0x361   : > { %1308 = vmax.xlane.f32.xlu0 %v2895_v54  ;;  %v2907_v60 = vadd.f32 %v2813_v14, %v1220_v58 }
 0x362   : > { %1310 = vmax.xlane.f32.xlu1 %v2899_v57 }
 0x365   : > { %v1975_v61 = vpop.f32.mrb[40].mxu0  ;;  %1304 = vmax.xlane.f32.xlu0 %v2904_v59 }
 0x366   : > { %v2911_v62 = vadd.f32 %v1975_v61, %v2813_v14  ;;  %v1233_v63 = vpop.f32.mrb[41].mxu0  ;;  %1306 = vmax.xlane.f32.xlu1 %v2907_v60 }
 0x367   : > { %v1976_v1 = vpop.f32.mrb[42].mxu0  ;;  %v2920_v5 = vadd.f32 %v2813_v14, %v1233_v63 }
 0x368   : > { %v2915_v2 = vadd.f32 %v1976_v1, %v2813_v14  ;;  %v1236_v4 = vpop.f32.mrb[43].mxu0 }
 0x369   : > { %1316 = vmax.xlane.f32.xlu0 %v2911_v62  ;;  %v2923_v6 = vadd.f32 %v2813_v14, %v1236_v4 }
 0x36a   : > { %1318 = vmax.xlane.f32.xlu1 %v2915_v2 }
 0x36d   : > { %v1979_v7 = vpop.f32.mrb[44].mxu0  ;;  %1312 = vmax.xlane.f32.xlu0 %v2920_v5 }
 0x36e   : > { %v1249_v8 = vpop.f32.mrb[45].mxu0  ;;  %1314 = vmax.xlane.f32.xlu1 %v2923_v6  ;;  %v2935_v13 = vadd.f32 %v1979_v7, %v2813_v14 }
 0x36f   : > { %v2928_v9 = vadd.f32 %v2813_v14, %v1249_v8  ;;  %v1980_v10 = vpop.f32.mrb[46].mxu0 }
 0x370   : > { %v1252_v11 = vpop.f32.mrb[47].mxu0  ;;  %v2939_v15 = vadd.f32 %v1980_v10, %v2813_v14 }
 0x371   : > { %v2931_v12 = vadd.f32 %v2813_v14, %v1252_v11  ;;  %1320 = vmax.xlane.f32.xlu0 %v2928_v9 }
 0x373   : > { %1322 = vmax.xlane.f32.xlu1 %v2931_v12 }
 0x375   : > { %1324 = vmax.xlane.f32.xlu0 %v2935_v13 }
 0x377   : > { %1326 = vmax.xlane.f32.xlu1 %v2939_v15 }
 0x3c5   : > { %v1269_v17 = vpop.xlane.xlu1 %1268 }
 0x3c6   : > { %v1330_v18 = vsub.f32 %v2816_v16, %v1269_v17  ;;  %v1265_v19 = vpop.xlane.xlu0 %1264 }
 0x3c7   : > { %v1328_v22 = vsub.f32 %v2819_v3, %v1265_v19 }
 0x3c8   : > { %v1364_v24 = vmul.f32 1.442695, %v1330_v18 }
 0x3c9   : > { %v1360_v25 = vmul.f32 1.442695, %v1328_v22  ;;  %v1271_v26 = vpop.xlane.xlu1 %1270 }
 0x3ca   : > { %2118 = vpow2.f32 %v1364_v24  ;;  %v1331_v29 = vsub.f32 %v2824_v20, %v1271_v26  ;;  %v1267_v30 = vpop.xlane.xlu0 %1266 }
 0x3cb   : > { %v1329_v14 = vsub.f32 %v2827_v21, %v1267_v30  ;;  %2120 = vpow2.f32 %v1360_v25 }
 0x3cc   : > { %v1366_v31 = vmul.f32 1.442695, %v1331_v29 }
 0x3cd   : > { %v1362_v33 = vmul.f32 1.442695, %v1329_v14 }
 0x3ce   : > { %2122 = vpow2.f32 %v1366_v31  ;;  %v1277_v36 = vpop.xlane.xlu0 %1276 }
 0x3cf   : > { %v1334_v39 = vsub.f32 %v2832_v23, %v1277_v36  ;;  %v1279_v16 = vpop.xlane.xlu1 %1278  ;;  %2124 = vpow2.f32 %v1362_v33 }
 0x3d0   : > { %v1335_v40 = vsub.f32 %v2835_v38, %v1279_v16 }
 0x3d1   : > { %v1372_v3 = vmul.f32 1.442695, %v1334_v39 }
 0x3d2   : > { %v1374_v42 = vmul.f32 1.442695, %v1335_v40  ;;  %v1273_v45 = vpop.xlane.xlu0 %1272 }
 0x3d3   : > { %2126 = vpow2.f32 %v1372_v3  ;;  %v1332_v20 = vsub.f32 %v2840_v0, %v1273_v45  ;;  %v1275_v47 = vpop.xlane.xlu1 %1274 }
 0x3d4   : > { %v2950_v48 = vpop.eup %2118  ;;  %v1333_v21 = vsub.f32 %v2843_v27, %v1275_v47  ;;  %2128 = vpow2.f32 %v1374_v42 }
 0x3d5   : > { %v1368_v50 = vmul.f32 1.442695, %v1332_v20  ;;  %1428 = vadd.xlane.f32.xlu0 %v2950_v48  ;;  %v2954_v55 = vpop.eup %2120 }
 0x3d6   : > { %v1370_v23 = vmul.f32 1.442695, %v1333_v21  ;;  %v1285_v53 = vpop.xlane.xlu0 %1284 }
 0x3d7   : > { %2130 = vpow2.f32 %v1368_v50  ;;  %v1338_v38 = vsub.f32 %v2847_v28, %v1285_v53  ;;  %v1287_v56 = vpop.xlane.xlu1 %1286 }
 0x3d8   : > { %v2957_v58 = vpop.eup %2122  ;;  %v1339_v0 = vsub.f32 %v2851_v32, %v1287_v56  ;;  %2132 = vpow2.f32 %v1370_v23 }
 0x3d9   : > { %v1380_v61 = vmul.f32 1.442695, %v1338_v38  ;;  %1430 = vadd.xlane.f32.xlu1 %v2957_v58  ;;  %1424 = vadd.xlane.f32.xlu0 %v2954_v55  ;;  %v2963_v7 = vpop.eup %2124 }
 0x3da   : > { %v1382_v27 = vmul.f32 1.442695, %v1339_v0  ;;  %v1281_v63 = vpop.xlane.xlu0 %1280 }
 0x3db   : > { %2134 = vpow2.f32 %v1380_v61  ;;  %v1336_v1 = vsub.f32 %v2856_v34, %v1281_v63  ;;  %v1283_v4 = vpop.xlane.xlu1 %1282 }
 0x3dc   : > { %v1337_v28 = vsub.f32 %v2859_v35, %v1283_v4  ;;  %2136 = vpow2.f32 %v1382_v27 }
 0x3dd   : > { %v2966_v8 = vpop.eup %2126  ;;  %v1376_v10 = vmul.f32 1.442695, %v1336_v1  ;;  %1426 = vadd.xlane.f32.xlu1 %v2963_v7 }
 0x3de   : > { %v1378_v32 = vmul.f32 1.442695, %v1337_v28  ;;  %1436 = vadd.xlane.f32.xlu0 %v2966_v8  ;;  %v1293_v11 = vpop.xlane.xlu0 %1292  ;;  %v2971_v34 = vpop.eup %2128 }
 0x3df   : > { %2138 = vpow2.f32 %v1376_v10  ;;  %v1342_v17 = vsub.f32 %v2863_v37, %v1293_v11  ;;  %v1295_v18 = vpop.xlane.xlu1 %1294 }
 0x3e0   : > { %v1343_v19 = vsub.f32 %v2867_v41, %v1295_v18  ;;  %2140 = vpow2.f32 %v1378_v32 }
 0x3e1   : > { %v2974_v22 = vpop.eup %2130  ;;  %v1388_v35 = vmul.f32 1.442695, %v1342_v17  ;;  %1438 = vadd.xlane.f32.xlu1 %v2971_v34 }
 0x3e2   : > { %v1390_v24 = vmul.f32 1.442695, %v1343_v19  ;;  %1432 = vadd.xlane.f32.xlu0 %v2974_v22  ;;  %v1289_v25 = vpop.xlane.xlu0 %1288  ;;  %v2979_v37 = vpop.eup %2132 }
 0x3e3   : > { %2142 = vpow2.f32 %v1388_v35  ;;  %v1340_v26 = vsub.f32 %v2872_v43, %v1289_v25  ;;  %v1291_v29 = vpop.xlane.xlu1 %1290 }
 0x3e4   : > { %v1341_v30 = vsub.f32 %v2875_v44, %v1291_v29  ;;  %2144 = vpow2.f32 %v1390_v24 }
 0x3e5   : > { %v2982_v14 = vpop.eup %2134  ;;  %v1384_v41 = vmul.f32 1.442695, %v1340_v26  ;;  %1434 = vadd.xlane.f32.xlu1 %v2979_v37 }
 0x3e6   : > { %v1386_v31 = vmul.f32 1.442695, %v1341_v30  ;;  %1444 = vadd.xlane.f32.xlu0 %v2982_v14  ;;  %v1301_v33 = vpop.xlane.xlu0 %1300  ;;  %v2987_v43 = vpop.eup %2136 }
 0x3e7   : > { %2146 = vpow2.f32 %v1384_v41  ;;  %v1346_v36 = vsub.f32 %v2879_v46, %v1301_v33  ;;  %v1303_v39 = vpop.xlane.xlu1 %1302 }
 0x3e8   : > { %v1347_v16 = vsub.f32 %v2883_v49, %v1303_v39  ;;  %2148 = vpow2.f32 %v1386_v31 }
 0x3e9   : > { %v2990_v40 = vpop.eup %2138  ;;  %v1396_v44 = vmul.f32 1.442695, %v1346_v36  ;;  %1446 = vadd.xlane.f32.xlu1 %v2987_v43 }
 0x3ea   : > { %v1398_v3 = vmul.f32 1.442695, %v1347_v16  ;;  %1440 = vadd.xlane.f32.xlu0 %v2990_v40  ;;  %v1297_v42 = vpop.xlane.xlu0 %1296  ;;  %v2995_v46 = vpop.eup %2140 }
 0x3eb   : > { %2150 = vpow2.f32 %v1396_v44  ;;  %v1344_v45 = vsub.f32 %v2888_v51, %v1297_v42  ;;  %v1299_v20 = vpop.xlane.xlu1 %1298 }
 0x3ec   : > { %v1345_v47 = vsub.f32 %v2891_v52, %v1299_v20  ;;  %2152 = vpow2.f32 %v1398_v3 }
 0x3ed   : > { %v2998_v21 = vpop.eup %2142  ;;  %v1392_v49 = vmul.f32 1.442695, %v1344_v45  ;;  %1442 = vadd.xlane.f32.xlu1 %v2995_v46 }
 0x3ee   : > { %v1394_v50 = vmul.f32 1.442695, %v1345_v47  ;;  %1452 = vadd.xlane.f32.xlu0 %v2998_v21  ;;  %v1309_v23 = vpop.xlane.xlu0 %1308  ;;  %v3003_v51 = vpop.eup %2144 }
 0x3ef   : > { %2154 = vpow2.f32 %v1392_v49  ;;  %v1350_v53 = vsub.f32 %v2895_v54, %v1309_v23  ;;  %v1311_v38 = vpop.xlane.xlu1 %1310 }
 0x3f0   : > { %v1351_v56 = vsub.f32 %v2899_v57, %v1311_v38  ;;  %2156 = vpow2.f32 %v1394_v50 }
 0x3f1   : > { %v3006_v0 = vpop.eup %2146  ;;  %v1404_v52 = vmul.f32 1.442695, %v1350_v53  ;;  %1454 = vadd.xlane.f32.xlu1 %v3003_v51 }
 0x3f2   : > { %v1406_v61 = vmul.f32 1.442695, %v1351_v56  ;;  %1448 = vadd.xlane.f32.xlu0 %v3006_v0  ;;  %v1305_v27 = vpop.xlane.xlu0 %1304  ;;  %v3011_v54 = vpop.eup %2148 }
 0x3f3   : > { %2158 = vpow2.f32 %v1404_v52  ;;  %v1348_v63 = vsub.f32 %v2904_v59, %v1305_v27  ;;  %v1307_v1 = vpop.xlane.xlu1 %1306 }
 0x3f4   : > { %v1349_v4 = vsub.f32 %v2907_v60, %v1307_v1  ;;  %2160 = vpow2.f32 %v1406_v61 }
 0x3f5   : > { %v3014_v28 = vpop.eup %2150  ;;  %v1400_v57 = vmul.f32 1.442695, %v1348_v63  ;;  %1450 = vadd.xlane.f32.xlu1 %v3011_v54 }
 0x3f6   : > { %v1402_v10 = vmul.f32 1.442695, %v1349_v4  ;;  %1460 = vadd.xlane.f32.xlu0 %v3014_v28  ;;  %v1317_v32 = vpop.xlane.xlu0 %1316  ;;  %v3019_v59 = vpop.eup %2152 }
 0x3f7   : > { %2162 = vpow2.f32 %v1400_v57  ;;  %v1354_v11 = vsub.f32 %v2911_v62, %v1317_v32  ;;  %v1319_v17 = vpop.xlane.xlu1 %1318 }
 0x3f8   : > { %v1355_v18 = vsub.f32 %v2915_v2, %v1319_v17  ;;  %2164 = vpow2.f32 %v1402_v10 }
 0x3f9   : > { %v3022_v19 = vpop.eup %2154  ;;  %v1412_v60 = vmul.f32 1.442695, %v1354_v11  ;;  %1462 = vadd.xlane.f32.xlu1 %v3019_v59 }
 0x3fa   : > { %v1414_v35 = vmul.f32 1.442695, %v1355_v18  ;;  %1456 = vadd.xlane.f32.xlu0 %v3022_v19  ;;  %v1313_v24 = vpop.xlane.xlu0 %1312  ;;  %v3027_v62 = vpop.eup %2156 }
 0x3fb   : > { %2166 = vpow2.f32 %v1412_v60  ;;  %v1352_v25 = vsub.f32 %v2920_v5, %v1313_v24  ;;  %v1315_v26 = vpop.xlane.xlu1 %1314 }
 0x3fc   : > { %v1353_v29 = vsub.f32 %v2923_v6, %v1315_v26  ;;  %2168 = vpow2.f32 %v1414_v35 }
 0x3fd   : > { %v3030_v30 = vpop.eup %2158  ;;  %v1408_v2 = vmul.f32 1.442695, %v1352_v25  ;;  %1458 = vadd.xlane.f32.xlu1 %v3027_v62 }
 0x3fe   : > { %v1410_v41 = vmul.f32 1.442695, %v1353_v29  ;;  %1468 = vadd.xlane.f32.xlu0 %v3030_v30  ;;  %v1321_v31 = vpop.xlane.xlu0 %1320  ;;  %v3035_v36 = vpop.eup %2160 }
 0x3ff   : > { %2170 = vpow2.f32 %v1408_v2  ;;  %v1356_v33 = vsub.f32 %v2928_v9, %v1321_v31 }
 0x400   : > { %v1323_v5 = vpop.xlane.xlu1 %1322  ;;  %2172 = vpow2.f32 %v1410_v41 }
 0x401   : > { %v3037_v39 = vpop.eup %2162  ;;  %v1416_v16 = vmul.f32 1.442695, %v1356_v33  ;;  %v1357_v6 = vsub.f32 %v2931_v12, %v1323_v5  ;;  %1470 = vadd.xlane.f32.xlu1 %v3035_v36 }
 0x402   : > { %1464 = vadd.xlane.f32.xlu0 %v3037_v39  ;;  %v1325_v44 = vpop.xlane.xlu0 %1324  ;;  %v3043_v45 = vpop.eup %2164 }
 0x403   : > { %2174 = vpow2.f32 %v1416_v16  ;;  %v1418_v3 = vmul.f32 1.442695, %v1357_v6  ;;  %v1358_v42 = vsub.f32 %v2935_v13, %v1325_v44 }
 0x404   : > { %v1327_v9 = vpop.xlane.xlu1 %1326 }
 0x405   : > { %v3045_v20 = vpop.eup %2166  ;;  %2176 = vpow2.f32 %v1418_v3  ;;  %v1420_v47 = vmul.f32 1.442695, %v1358_v42  ;;  %v1359_v49 = vsub.f32 %v2939_v15, %v1327_v9  ;;  %1466 = vadd.xlane.f32.xlu1 %v3043_v45 }
 0x406   : > { %1476 = vadd.xlane.f32.xlu0 %v3045_v20  ;;  %v3050_v50 = vpop.eup %2168 }
 0x407   : > { %2178 = vpow2.f32 %v1420_v47  ;;  %v1422_v12 = vmul.f32 1.442695, %v1359_v49 }
 0x409   : > { %v3052_v23 = vpop.eup %2170  ;;  %2180 = vpow2.f32 %v1422_v12  ;;  %1478 = vadd.xlane.f32.xlu1 %v3050_v50 }
 0x40a   : > { %1472 = vadd.xlane.f32.xlu0 %v3052_v23  ;;  %v3056_v13 = vpop.eup %2172 }
 0x40d   : > { %v3058_v53 = vpop.eup %2174  ;;  %1474 = vadd.xlane.f32.xlu1 %v3056_v13 }
 0x40e   : > { %1480 = vadd.xlane.f32.xlu0 %v3058_v53 }
 0x40f   : > { %v3062_v15 = vpop.eup %2176 }
 0x411   : > { %v3064_v38 = vpop.eup %2178  ;;  %1482 = vadd.xlane.f32.xlu1 %v3062_v15 }
 0x412   : > { %1484 = vadd.xlane.f32.xlu0 %v3064_v38 }
 0x413   : > { %v3068_v56 = vpop.eup %2180 }
 0x415   : > { %1486 = vadd.xlane.f32.xlu1 %v3068_v56 }
 0x462   : > { %v1429_v52 = vpop.xlane.xlu0 %1428 }
 0x463   : > { %2182 = vrcp.f32 %v1429_v52 }
 0x466   : > { %v1431_v61 = vpop.xlane.xlu1 %1430  ;;  %v1425_v27 = vpop.xlane.xlu0 %1424 }
 0x467   : > { %2184 = vrcp.f32 %v1431_v61 }
 0x468   : > { %2186 = vrcp.f32 %v1425_v27 }
 0x46a   : > { %v1427_v63 = vpop.xlane.xlu1 %1426 }
 0x46b   : > { %2188 = vrcp.f32 %v1427_v63  ;;  %v1437_v1 = vpop.xlane.xlu0 %1436 }
 0x46c   : > { %2190 = vrcp.f32 %v1437_v1 }
 0x46d   : > { %v2183_v4 = vpop.eup %2182 }
 0x46e   : > { %v1522_v57 = vmul.f32 %v2183_v4, %v2950_v48  ;;  %v1439_v10 = vpop.xlane.xlu1 %1438 }
 0x46f   : > { %2192 = vrcp.f32 %v1439_v10  ;;  %v1433_v32 = vpop.xlane.xlu0 %1432 }
 0x470   : > { %1554 = vst [vmem:[%s3073_s12 + $0x10] sm:$0xff] %v1522_v57  ;;  %2194 = vrcp.f32 %v1433_v32 }
 0x471   : > { %v2185_v11 = vpop.eup %2184 }
 0x472   : > { %v2187_v17 = vpop.eup %2186  ;;  %v1523_v18 = vmul.f32 %v2185_v11, %v2957_v58  ;;  %v1435_v60 = vpop.xlane.xlu1 %1434 }
 0x473   : > { %v1520_v35 = vmul.f32 %v2187_v17, %v2954_v55  ;;  %2196 = vrcp.f32 %v1435_v60  ;;  %v1445_v48 = vpop.xlane.xlu0 %1444 }
 0x474   : > { %1555 = vst [vmem:[%s3073_s12 + $0x18] sm:$0xff] %v1523_v18  ;;  %2198 = vrcp.f32 %v1445_v48 }
 0x475   : > { %v2189_v24 = vpop.eup %2188  ;;  %1552 = vst [vmem:[%s3073_s12] sm:$0xff] %v1520_v35 }
 0x476   : > { %v2191_v25 = vpop.eup %2190  ;;  %v1521_v26 = vmul.f32 %v2189_v24, %v2963_v7  ;;  %v1447_v29 = vpop.xlane.xlu1 %1446 }
 0x477   : > { %v1526_v2 = vmul.f32 %v2191_v25, %v2966_v8  ;;  %2200 = vrcp.f32 %v1447_v29  ;;  %v1441_v58 = vpop.xlane.xlu0 %1440 }
 0x478   : > { %1553 = vst [vmem:[%s3073_s12 + $0x8] sm:$0xff] %v1521_v26  ;;  %2202 = vrcp.f32 %v1441_v58 }
 0x479   : > { %v2193_v55 = vpop.eup %2192  ;;  %1558 = vst [vmem:[%s3073_s12 + $0x30] sm:$0xff] %v1526_v2 }
 0x47a   : > { %v2195_v41 = vpop.eup %2194  ;;  %v1527_v31 = vmul.f32 %v2193_v55, %v2971_v34  ;;  %v1443_v33 = vpop.xlane.xlu1 %1442 }
 0x47b   : > { %v1524_v5 = vmul.f32 %v2195_v41, %v2974_v22  ;;  %2204 = vrcp.f32 %v1443_v33  ;;  %v1453_v7 = vpop.xlane.xlu0 %1452 }
 0x47c   : > { %1559 = vst [vmem:[%s3073_s12 + $0x38] sm:$0xff] %v1527_v31  ;;  %2206 = vrcp.f32 %v1453_v7 }
 0x47d   : > { %v2197_v8 = vpop.eup %2196  ;;  %1556 = vst [vmem:[%s3073_s12 + $0x20] sm:$0xff] %v1524_v5 }
 0x47e   : > { %v2199_v16 = vpop.eup %2198  ;;  %v1525_v6 = vmul.f32 %v2197_v8, %v2979_v37  ;;  %v1455_v44 = vpop.xlane.xlu1 %1454 }
 0x47f   : > { %v1530_v3 = vmul.f32 %v2199_v16, %v2982_v14  ;;  %2208 = vrcp.f32 %v1455_v44  ;;  %v1449_v34 = vpop.xlane.xlu0 %1448 }
 0x480   : > { %1557 = vst [vmem:[%s3073_s12 + $0x28] sm:$0xff] %v1525_v6  ;;  %2210 = vrcp.f32 %v1449_v34 }
 0x481   : > { %v2201_v22 = vpop.eup %2200  ;;  %1562 = vst [vmem:[%s3073_s12 + $0x50] sm:$0xff] %v1530_v3 }
 0x482   : > { %v2203_v42 = vpop.eup %2202  ;;  %v1531_v9 = vmul.f32 %v2201_v22, %v2987_v43  ;;  %v1451_v47 = vpop.xlane.xlu1 %1450 }
 0x483   : > { %v1528_v49 = vmul.f32 %v2203_v42, %v2990_v40  ;;  %2212 = vrcp.f32 %v1451_v47  ;;  %v1461_v37 = vpop.xlane.xlu0 %1460 }
 0x484   : > { %1563 = vst [vmem:[%s3073_s12 + $0x58] sm:$0xff] %v1531_v9  ;;  %2214 = vrcp.f32 %v1461_v37 }
 0x485   : > { %v2205_v14 = vpop.eup %2204  ;;  %1560 = vst [vmem:[%s3073_s12 + $0x40] sm:$0xff] %v1528_v49 }
 0x486   : > { %v2207_v12 = vpop.eup %2206  ;;  %v1529_v52 = vmul.f32 %v2205_v14, %v2995_v46  ;;  %v1463_v61 = vpop.xlane.xlu1 %1462 }
 0x487   : > { %v1534_v27 = vmul.f32 %v2207_v12, %v2998_v21  ;;  %2216 = vrcp.f32 %v1463_v61  ;;  %v1457_v43 = vpop.xlane.xlu0 %1456 }
 0x488   : > { %1561 = vst [vmem:[%s3073_s12 + $0x48] sm:$0xff] %v1529_v52  ;;  %2218 = vrcp.f32 %v1457_v43 }
 0x489   : > { %v2209_v40 = vpop.eup %2208  ;;  %1566 = vst [vmem:[%s3073_s12 + $0x70] sm:$0xff] %v1534_v27 }
 0x48a   : > { %v2211_v63 = vpop.eup %2210  ;;  %v1535_v1 = vmul.f32 %v2209_v40, %v3003_v51  ;;  %v1459_v4 = vpop.xlane.xlu1 %1458 }
 0x48b   : > { %v1532_v57 = vmul.f32 %v2211_v63, %v3006_v0  ;;  %2220 = vrcp.f32 %v1459_v4  ;;  %v1469_v46 = vpop.xlane.xlu0 %1468 }
 0x48c   : > { %1567 = vst [vmem:[%s3073_s12 + $0x78] sm:$0xff] %v1535_v1  ;;  %2222 = vrcp.f32 %v1469_v46 }
 0x48d   : > { %v2213_v21 = vpop.eup %2212  ;;  %1564 = vst [vmem:[%s3073_s12 + $0x60] sm:$0xff] %v1532_v57 }
 0x48e   : > { %v2215_v10 = vpop.eup %2214  ;;  %v1533_v32 = vmul.f32 %v2213_v21, %v3011_v54  ;;  %v1471_v11 = vpop.xlane.xlu1 %1470 }
 0x48f   : > { %v1538_v17 = vmul.f32 %v2215_v10, %v3014_v28  ;;  %2224 = vrcp.f32 %v1471_v11  ;;  %v1465_v51 = vpop.xlane.xlu0 %1464 }
 0x490   : > { %1565 = vst [vmem:[%s3073_s12 + $0x68] sm:$0xff] %v1533_v32  ;;  %2226 = vrcp.f32 %v1465_v51 }
 0x491   : > { %v2217_v0 = vpop.eup %2216  ;;  %1570 = vst [vmem:[%s3073_s12 + $0x90] sm:$0xff] %v1538_v17 }
 0x492   : > { %v2219_v18 = vpop.eup %2218  ;;  %v1539_v60 = vmul.f32 %v2217_v0, %v3019_v59  ;;  %v1467_v35 = vpop.xlane.xlu1 %1466 }
 0x493   : > { %v1536_v48 = vmul.f32 %v2219_v18, %v3022_v19  ;;  %2228 = vrcp.f32 %v1467_v35  ;;  %v1477_v54 = vpop.xlane.xlu0 %1476 }
 0x494   : > { %1571 = vst [vmem:[%s3073_s12 + $0x98] sm:$0xff] %v1539_v60  ;;  %2230 = vrcp.f32 %v1477_v54 }
 0x495   : > { %v2221_v28 = vpop.eup %2220  ;;  %1568 = vst [vmem:[%s3073_s12 + $0x80] sm:$0xff] %v1536_v48 }
 0x496   : > { %v2223_v24 = vpop.eup %2222  ;;  %v1537_v25 = vmul.f32 %v2221_v28, %v3027_v62  ;;  %v1479_v26 = vpop.xlane.xlu1 %1478 }
 0x497   : > { %v1542_v29 = vmul.f32 %v2223_v24, %v3030_v30  ;;  %2232 = vrcp.f32 %v1479_v26  ;;  %v1473_v59 = vpop.xlane.xlu0 %1472 }
 0x498   : > { %1569 = vst [vmem:[%s3073_s12 + $0x88] sm:$0xff] %v1537_v25  ;;  %2234 = vrcp.f32 %v1473_v59 }
 0x499   : > { %v2225_v19 = vpop.eup %2224  ;;  %1574 = vst [vmem:[%s3073_s12 + $0xb0] sm:$0xff] %v1542_v29 }
 0x49a   : > { %v2227_v2 = vpop.eup %2226  ;;  %v1543_v58 = vmul.f32 %v2225_v19, %v3035_v36  ;;  %v1475_v55 = vpop.xlane.xlu1 %1474 }
 0x49b   : > { %v1540_v41 = vmul.f32 %v2227_v2, %v3037_v39  ;;  %2236 = vrcp.f32 %v1475_v55  ;;  %v1481_v62 = vpop.xlane.xlu0 %1480 }
 0x49c   : > { %1575 = vst [vmem:[%s3073_s12 + $0xb8] sm:$0xff] %v1543_v58  ;;  %2238 = vrcp.f32 %v1481_v62 }
 0x49d   : > { %v2229_v30 = vpop.eup %2228  ;;  %1572 = vst [vmem:[%s3073_s12 + $0xa0] sm:$0xff] %v1540_v41 }
 0x49e   : > { %v2231_v31 = vpop.eup %2230  ;;  %v1541_v33 = vmul.f32 %v2229_v30, %v3043_v45  ;;  %v1483_v5 = vpop.xlane.xlu1 %1482 }
 0x49f   : > { %v1546_v7 = vmul.f32 %v2231_v31, %v3045_v20  ;;  %2240 = vrcp.f32 %v1483_v5  ;;  %v1485_v36 = vpop.xlane.xlu0 %1484 }
 0x4a0   : > { %1573 = vst [vmem:[%s3073_s12 + $0xa8] sm:$0xff] %v1541_v33  ;;  %2242 = vrcp.f32 %v1485_v36 }
 0x4a1   : > { %v2233_v39 = vpop.eup %2232  ;;  %1578 = vst [vmem:[%s3073_s12 + $0xd0] sm:$0xff] %v1546_v7 }
 0x4a2   : > { %v2235_v8 = vpop.eup %2234  ;;  %v1547_v16 = vmul.f32 %v2233_v39, %v3050_v50  ;;  %v1487_v6 = vpop.xlane.xlu1 %1486 }
 0x4a3   : > { %v1544_v45 = vmul.f32 %v2235_v8, %v3052_v23  ;;  %2244 = vrcp.f32 %v1487_v6 }
 0x4a4   : > { %1579 = vst [vmem:[%s3073_s12 + $0xd8] sm:$0xff] %v1547_v16 }
 0x4a5   : > { %v2237_v20 = vpop.eup %2236  ;;  %1576 = vst [vmem:[%s3073_s12 + $0xc0] sm:$0xff] %v1544_v45 }
 0x4a6   : > { %v2239_v44 = vpop.eup %2238  ;;  %v1545_v3 = vmul.f32 %v2237_v20, %v3056_v13 }
 0x4a7   : > { %v1548_v34 = vmul.f32 %v2239_v44, %v3058_v53 }
 0x4a8   : > { %1577 = vst [vmem:[%s3073_s12 + $0xc8] sm:$0xff] %v1545_v3 }
 0x4a9   : > { %v2241_v22 = vpop.eup %2240  ;;  %1580 = vst [vmem:[%s3073_s12 + $0xe0] sm:$0xff] %v1548_v34 }
 0x4aa   : > { %v2243_v50 = vpop.eup %2242  ;;  %v1549_v23 = vmul.f32 %v2241_v22, %v3062_v15 }
 0x4ab   : > { %v1550_v42 = vmul.f32 %v2243_v50, %v3064_v38 }
 0x4ac   : > { %1581 = vst [vmem:[%s3073_s12 + $0xe8] sm:$0xff] %v1549_v23 }
 0x4ad   : > { %v2245_v9 = vpop.eup %2244  ;;  %1582 = vst [vmem:[%s3073_s12 + $0xf0] sm:$0xff] %v1550_v42 }
 0x4ae   : > { %v1551_v13 = vmul.f32 %v2245_v9, %v3068_v56 }
 0x4b0   : > { %1583 = vst [vmem:[%s3073_s12 + $0xf8] sm:$0xff] %v1551_v13 }
 0x4b1   : > { %2373 = shalt.err (!%p2370_p4)
}
 0x4b2   : > { %s2374_s15 = scalar_lea.hbm %s3141_s11, 4096  ;;  %s2378_s8 = scalar_lea.hbm %s3196_s7, 8192 }
 0x4b3   : > { %p2375_p9 = scmp.ne.s32.totalorder %s3141_s11, %s2374_s15  ;;  %p2379_p8 = scmp.lt.u32.totalorder %s3141_s11, %s3196_s7 }
 0x4b4   : > { %p2380_p13 = scmp.lt.u32.totalorder %s2378_s8, %s2374_s15  ;;  %p2382_p10 = scmp.lt.u32.totalorder %s2374_s15, %s3141_s11 }
 0x4b5   : > { %p2376_p0 = pnand %p2375_p9, %p2639_p5 }
 0x4b6   : > { %p2381_p6 = por %p2380_p13, %p2379_p8 }
 0x4b7   : > { %p2377_p11 = pneg %p2376_p0 }
 0x4b8   : > { %p2383_p3 = por %p2382_p10, %p2381_p6 }
 0x4ba   : > { %p2384_p7 = pnand %p2383_p3, %p2377_p11 }
 0x4bc   : > { %2387 = shalt.err (!%p2384_p7)
}
 0x4bd   : > { %s2443_s29 = smov 128   ;;  %s2444_s23 = smov 8  }
 0x4be   : > { %2011 = dma.vmem_to_hbm [thread:$0]  (%p2639_p5), %s3143_s16, 4096, %s3141_s11, %s1585_s28, %s2443_s29, %s2443_s29, %s2444_s23  }
 0x4bf PF: > { %s3216_s20 = sld [smem:[#allocation15_spill]]  ;;  %s1613_s30 = sand.u32 1, %s2422_s24  }
 0x4c0   : > { %p3218_p1 = scmp.ge.s32.totalorder %s2434_s27, 2  ;;  %s1614_s9 = scalar_lea.sflag [#allocation4], %s1613_s30 }
 0x4c5   : > { %p3217_p12 = scmp.ne.s32.totalorder %s3216_s20, 0 }
 0x4c7   : > { %p2028_p2 = pnand %p3218_p1, %p3217_p12 }
 0x4c9   : > { %2417 = dma.done.wait (!%p2028_p2), %s1614_s9, 4096  }
 0x4ca   : > { %2419 = vsyncadd (!%p2028_p2), %s1614_s9, 4294963200  ;;  %p22_p4 = scmp.ge.s32.totalorder %s2625_s22, 4   ;;  %s3219_s24 = smov %s2426_s25 }
 0x4cb   : > { %s3220_s25 = smov %s2430_s26  ;;  %s3221_s26 = smov %s2635_s18 }
 0x4cc   : > { %s3222_s27 = smov %s2625_s22  ;;  %24 = sbr.rel (!%p22_p4) target bundleno = 7 (0x7), region = 105 }
 0x4d3   :  { %1619 = vsyncpa [#allocation3], 1 }
 0x4d4   :  { %1621 = vsyncpa [#allocation3 + $0x1], 1 }
 0x4d5   :  { %1622 = vsyncpa [#allocation6], 1 }
 0x4d6   :  { %1623 = vsyncpa [#allocation9], 1 }
 0x4d7   :  { %1624 = vsyncpa [#allocation4], 1 }
 0x4d8   :  { %1626 = vsyncpa [#allocation4 + $0x1], 1 }

</bundles_post_ra>
